<compile_context>
chip_gen: v7x
topology: tpu7x:2x2x1
jax: 0.10.0
libtpu: 0.0.40
codegen_flags: <defaults>
</compile_context>

<pallas_src>
import jax
import jax.numpy as jnp
from jax.experimental import pallas as pl
from jax.experimental.pallas import tpu as pltpu


def _round_up(n, m):
    return ((n + m - 1) // m) * m


def qnetwork_kernel(xt_ref, w1_ref, b1_ref, w2_ref, b2_ref, w3_ref, b3_ref, o_ref):
    # xt: [16, TB]    bf16   (features x batch tile)
    # w1: [256, 16]   bf16   b1: [256, 1] f32
    # w2: [256, 256]  bf16   b2: [256, 1] f32
    # w3: [256, 1]    f32    b3: [1, 1]   f32
    # o : [1, 1, TB]  f32
    xt = xt_ref[...]

    # fc1 + ReLU: bf16 MXU inputs, f32 accumulation / bias / activation.
    h1 = jnp.dot(w1_ref[...], xt, preferred_element_type=jnp.float32) + b1_ref[...]
    h1 = jnp.maximum(h1, 0.0)

    # fc2 + ReLU.
    h2 = jnp.dot(w2_ref[...], h1.astype(w2_ref.dtype),
                 preferred_element_type=jnp.float32) + b2_ref[...]
    h2 = jnp.maximum(h2, 0.0)

    # q head: 1-wide output -> VPU multiply + sublane reduction (MXU stays on
    # the wide matmuls).  w3 stays f32 -> no double rounding of head weights.
    q = jnp.sum(h2 * w3_ref[...], axis=0, keepdims=True) + b3_ref[...]   # [1, TB]

    # Lane-dense store: q is already a [1, TB] row; write it as this tile's
    # (1, 1, TB) output block (unmasked vst, no [TB, 1] partial stores).
    o_ref[0] = q.astype(o_ref.dtype)


def _batch_dim_semantics():
    """CORE_PARALLEL on v7x (2 TCs per chip); plain 'parallel' elsewhere."""
    kind = ""
    try:
        kind = jax.devices()[0].device_kind.lower()
    except Exception:
        pass
    if "v7" in kind:
        return (pltpu.CORE_PARALLEL,)
    return ("parallel",)


def qnetwork_forward(x, params, *, block_batch=2048):
    """x: [B, state_action_dim] float32 -> [B, q_value_dim] float32.

    params are in PyTorch nn.Linear layout: w [out, in], b [out].
    """
    w1, b1, w2, b2, w3, b3 = params
    B, in_dim = x.shape
    hid = w1.shape[0]
    q_dim = w3.shape[0]
    assert q_dim == 1, "q head path assumes q_value_dim == 1"

    # Batch-tile selection:
    #   single tile  -> round batch to 16 rows (bf16 packing) and take it all;
    #   multi tile   -> tiles rounded to 128 (lane width) so x / output blocks
    #                   stay lane-aligned; default 2048 amortizes the ~0.35 us
    #                   per-grid-step overhead while keeping VMEM use ~17 MB.
    B_up = _round_up(B, 16)
    if B_up <= block_batch:
        TB = B_up
    else:
        TB = _round_up(min(block_batch, B_up), 128)
    num_tiles = pl.cdiv(B, TB)
    B_pad = num_tiles * TB

    # bf16 MXU operands for x/w1/w2; f32 biases and f32 head weights.
    x_b = x.astype(jnp.bfloat16)
    if B_pad != B:
        x_b = jnp.pad(x_b, ((0, B_pad - B), (0, 0)))
    xt_b = x_b.T                                        # [in_dim, B_pad]
    w1_b = w1.astype(jnp.bfloat16)                      # [hid, in_dim]
    w2_b = w2.astype(jnp.bfloat16)                      # [hid, hid]
    w3_c = w3.astype(jnp.float32).T                     # [hid, 1]  (f32!)
    b1_c = b1.astype(jnp.float32).reshape(hid, 1)
    b2_c = b2.astype(jnp.float32).reshape(hid, 1)
    b3_c = b3.astype(jnp.float32).reshape(1, 1)

    # Explicit VMEM budget: tile working set + resident weights, with headroom.
    vmem_need = (
        4 * TB * in_dim * 2                      # x tiles (bf16, dbl-buffered)
        + 4 * TB * 4                             # out tiles (f32, dbl-buffered)
        + 4 * (hid * in_dim + hid * hid + 3 * hid + 1) * 4   # weights/biases
        + 8 * TB * hid * 4                       # h1/h2 f32 + bf16 copies + temps
    )
    vmem_limit = int(min(max(vmem_need, 32 * 1024 * 1024), 64 * 1024 * 1024))

    flops = 2 * B_pad * (in_dim * hid + hid * hid + hid)
    bytes_accessed = (
        B_pad * in_dim * 2                       # x (bf16)
        + (hid * in_dim + hid * hid) * 2         # w1, w2 (bf16)
        + (3 * hid + 1) * 4                      # b1, b2, w3, b3 (f32)
        + B_pad * 4                              # q out (f32)
    )

    def _call(dim_semantics):
        return pl.pallas_call(
            qnetwork_kernel,
            out_shape=jax.ShapeDtypeStruct((num_tiles, 1, TB), jnp.float32),
            grid=(num_tiles,),
            in_specs=[
                pl.BlockSpec((in_dim, TB), lambda i: (0, i)),   # x^T: tiled over batch
                pl.BlockSpec((hid, in_dim), lambda i: (0, 0)),  # w1: VMEM-resident
                pl.BlockSpec((hid, 1), lambda i: (0, 0)),       # b1
                pl.BlockSpec((hid, hid), lambda i: (0, 0)),     # w2
                pl.BlockSpec((hid, 1), lambda i: (0, 0)),       # b2
                pl.BlockSpec((hid, 1), lambda i: (0, 0)),       # w3 (f32 column)
                pl.BlockSpec((1, 1), lambda i: (0, 0)),         # b3
            ],
            out_specs=pl.BlockSpec((1, 1, TB), lambda i: (i, 0, 0)),
            compiler_params=pltpu.CompilerParams(
                dimension_semantics=dim_semantics,
                vmem_limit_bytes=vmem_limit),
            cost_estimate=pl.CostEstimate(
                flops=flops, transcendentals=0, bytes_accessed=bytes_accessed),
        )(xt_b, w1_b, b1_c, w2_b, b2_c, w3_c, b3_c)

    try:
        out = _call(_batch_dim_semantics())
    except Exception:
        # Conservative fallback (e.g. if CORE_PARALLEL is rejected on some
        # runtime): plain sequential grid semantics, numerically identical.
        out = _call(("arbitrary",))

    # (num_tiles, 1, TB) -> (B, 1), dropping padded tail rows.
    return out.reshape(B_pad)[:B].reshape(B, 1)


def init_params(key, state_action_dim=16, hidden_dim=256, q_value_dim=1):
    """PyTorch nn.Linear default init (U[-1/sqrt(fan_in), 1/sqrt(fan_in)]).

    Weights stored in PyTorch layout [out_features, in_features]; biases [out]."""
    keys = jax.random.split(key, 6)

    def uniform(k, shape, fan_in):
        bound = 1.0 / jnp.sqrt(jnp.float32(fan_in))
        return jax.random.uniform(k, shape, jnp.float32, -bound, bound)

    w1 = uniform(keys[0], (hidden_dim, state_action_dim), state_action_dim)
    b1 = uniform(keys[1], (hidden_dim,), state_action_dim)
    w2 = uniform(keys[2], (hidden_dim, hidden_dim), hidden_dim)
    b2 = uniform(keys[3], (hidden_dim,), hidden_dim)
    w3 = uniform(keys[4], (q_value_dim, hidden_dim), hidden_dim)
    b3 = uniform(keys[5], (q_value_dim,), hidden_dim)
    return (w1, b1, w2, b2, w3, b3)


def reference_forward(x, params):
    w1, b1, w2, b2, w3, b3 = params
    h1 = jnp.maximum(x @ w1.T + b1, 0.0)
    h2 = jnp.maximum(h1 @ w2.T + b2, 0.0)
    return h2 @ w3.T + b3


if __name__ == "__main__":
    key = jax.random.PRNGKey(0)
    k_params, k_x1, k_x2 = jax.random.split(key, 3)

    state_action_dim, hidden_dim, q_value_dim = 16, 256, 1
    params = init_params(k_params, state_action_dim, hidden_dim, q_value_dim)

    # 1) Small, odd batch -> single-tile path (TB rounded 20 -> 32).
    x_small = jax.random.normal(k_x1, (20, state_action_dim), jnp.float32)
    q_small = jax.block_until_ready(qnetwork_forward(x_small, params))
    q_small_ref = reference_forward(x_small, params)
    assert q_small.shape == (20, q_value_dim)
    # bf16 MXU operands with f32 accumulation -> loosened tolerance vs f32 ref.
    assert jnp.allclose(q_small, q_small_ref, atol=5e-2, rtol=5e-2)

    # 2) Larger batch with an explicit 128-row tile -> multi-step pipelined
    #    grid (3 tiles, padded tail rows sliced off).
    x_big = jax.random.normal(k_x2, (300, state_action_dim), jnp.float32)
    q_big = jax.block_until_ready(qnetwork_forward(x_big, params, block_batch=128))
    q_big_ref = reference_forward(x_big, params)
    assert q_big.shape == (300, q_value_dim)
    assert jnp.allclose(q_big, q_big_ref, atol=5e-2, rtol=5e-2)

    print("KERNEL_OK")
</pallas_src>

<mosaic_0001>
module attributes {stable_mosaic.version = 11 : i64} {
  func.func @qnetwork_kernel(%arg0: i32, %arg1: memref<16x32xbf16, #tpu.memory_space<vmem>>, %arg2: memref<256x16xbf16, #tpu.memory_space<vmem>>, %arg3: memref<256x1xf32, #tpu.memory_space<vmem>>, %arg4: memref<256x256xbf16, #tpu.memory_space<vmem>>, %arg5: memref<256x1xf32, #tpu.memory_space<vmem>>, %arg6: memref<256x1xf32, #tpu.memory_space<vmem>>, %arg7: memref<1x1xf32, #tpu.memory_space<vmem>>, %arg8: memref<1x1x32xf32, #tpu.memory_space<vmem>>) attributes {dimension_semantics = [#tpu.dimension_semantics<parallel>], iteration_bounds = array<i64: 1>, scalar_prefetch = 0 : i64, scratch_operands = 0 : i64, tpu.core_type = #tpu.core_type<tc>, window_params = [{transform_indices = @transform_0, window_bounds = array<i64: 16, 32>}, {pipeline_mode = #tpu.pipeline_mode<synchronous>, transform_indices = @transform_1, window_bounds = array<i64: 256, 16>}, {pipeline_mode = #tpu.pipeline_mode<synchronous>, transform_indices = @transform_2, window_bounds = array<i64: 256, 1>}, {pipeline_mode = #tpu.pipeline_mode<synchronous>, transform_indices = @transform_3, window_bounds = array<i64: 256, 256>}, {pipeline_mode = #tpu.pipeline_mode<synchronous>, transform_indices = @transform_4, window_bounds = array<i64: 256, 1>}, {pipeline_mode = #tpu.pipeline_mode<synchronous>, transform_indices = @transform_5, window_bounds = array<i64: 256, 1>}, {pipeline_mode = #tpu.pipeline_mode<synchronous>, transform_indices = @transform_6, window_bounds = array<i64: 1, 1>}, {transform_indices = @transform_7, window_bounds = array<i64: 1, 1, 32>}]} {
    %c0 = arith.constant 0 : index
    %c0_0 = arith.constant 0 : index
    %0 = vector.load %arg1[%c0, %c0_0] : memref<16x32xbf16, #tpu.memory_space<vmem>>, vector<16x32xbf16>
    %c0_1 = arith.constant 0 : index
    %c0_2 = arith.constant 0 : index
    %1 = vector.load %arg2[%c0_1, %c0_2] : memref<256x16xbf16, #tpu.memory_space<vmem>>, vector<256x16xbf16>
    %cst = arith.constant dense<0.000000e+00> : vector<256x32xf32>
    %2 = tpu.matmul %1, %0, %cst {dimension_numbers = #tpu.dot_dimension_numbers<[1], [0], [0], [1], [0, 0, 1, 1], [], []>} : vector<256x16xbf16>, vector<16x32xbf16>, vector<256x32xf32> -> vector<256x32xf32>
    %c0_3 = arith.constant 0 : index
    %c0_4 = arith.constant 0 : index
    %3 = vector.load %arg3[%c0_3, %c0_4] : memref<256x1xf32, #tpu.memory_space<vmem>>, vector<256x1xf32>
    %4 = vector.broadcast %3 : vector<256x1xf32> to vector<256x32xf32>
    %5 = arith.addf %2, %4 : vector<256x32xf32>
    %cst_5 = arith.constant 0.000000e+00 : f32
    %6 = vector.broadcast %cst_5 : f32 to vector<256x32xf32>
    %7 = arith.maximumf %5, %6 : vector<256x32xf32>
    %c0_6 = arith.constant 0 : index
    %c0_7 = arith.constant 0 : index
    %8 = vector.load %arg4[%c0_6, %c0_7] : memref<256x256xbf16, #tpu.memory_space<vmem>>, vector<256x256xbf16>
    %9 = arith.truncf %7 : vector<256x32xf32> to vector<256x32xbf16>
    %cst_8 = arith.constant dense<0.000000e+00> : vector<256x32xf32>
    %10 = tpu.matmul %8, %9, %cst_8 {dimension_numbers = #tpu.dot_dimension_numbers<[1], [0], [0], [1], [0, 0, 1, 1], [], []>} : vector<256x256xbf16>, vector<256x32xbf16>, vector<256x32xf32> -> vector<256x32xf32>
    %c0_9 = arith.constant 0 : index
    %c0_10 = arith.constant 0 : index
    %11 = vector.load %arg5[%c0_9, %c0_10] : memref<256x1xf32, #tpu.memory_space<vmem>>, vector<256x1xf32>
    %12 = vector.broadcast %11 : vector<256x1xf32> to vector<256x32xf32>
    %13 = arith.addf %10, %12 : vector<256x32xf32>
    %cst_11 = arith.constant 0.000000e+00 : f32
    %14 = vector.broadcast %cst_11 : f32 to vector<256x32xf32>
    %15 = arith.maximumf %13, %14 : vector<256x32xf32>
    %c0_12 = arith.constant 0 : index
    %c0_13 = arith.constant 0 : index
    %16 = vector.load %arg6[%c0_12, %c0_13] : memref<256x1xf32, #tpu.memory_space<vmem>>, vector<256x1xf32>
    %17 = vector.broadcast %16 : vector<256x1xf32> to vector<256x32xf32>
    %18 = arith.mulf %15, %17 : vector<256x32xf32>
    %cst_14 = arith.constant dense<0.000000e+00> : vector<32xf32>
    %19 = vector.multi_reduction <add>, %18, %cst_14 [0] : vector<256x32xf32> to vector<32xf32>
    %20 = vector.shape_cast %19 : vector<32xf32> to vector<1x32xf32>
    %c0_15 = arith.constant 0 : index
    %c0_16 = arith.constant 0 : index
    %21 = vector.load %arg7[%c0_15, %c0_16] : memref<1x1xf32, #tpu.memory_space<vmem>>, vector<1x1xf32>
    %22 = vector.broadcast %21 : vector<1x1xf32> to vector<1x32xf32>
    %23 = arith.addf %20, %22 : vector<1x32xf32>
    %c0_17 = arith.constant 0 : index
    %c0_18 = arith.constant 0 : index
    %c0_19 = arith.constant 0 : index
    %24 = vector.load %arg8[%c0_17, %c0_18, %c0_19] : memref<1x1x32xf32, #tpu.memory_space<vmem>>, vector<1x1x32xf32>
    %25 = vector.shape_cast %24 : vector<1x1x32xf32> to vector<1x32xf32>
    %26 = vector.shape_cast %23 : vector<1x32xf32> to vector<1x1x32xf32>
    tpu.vector_store %arg8[%c0_17, %c0_18, %c0_19], %26 {strides = array<i32>} : memref<1x1x32xf32, #tpu.memory_space<vmem>>, vector<1x1x32xf32>,
    return
  }
  func.func @transform_0(%arg0: i32) -> (i32, i32) {
    %c0_i32 = arith.constant 0 : i32
    %c0_i32_0 = arith.constant 0 : i32
    return %c0_i32, %arg0 : i32, i32
  }
  func.func @transform_1(%arg0: i32) -> (i32, i32) {
    %c0_i32 = arith.constant 0 : i32
    %c0_i32_0 = arith.constant 0 : i32
    %c0_i32_1 = arith.constant 0 : i32
    return %c0_i32, %c0_i32_0 : i32, i32
  }
  func.func @transform_2(%arg0: i32) -> (i32, i32) {
    %c0_i32 = arith.constant 0 : i32
    %c0_i32_0 = arith.constant 0 : i32
    %c0_i32_1 = arith.constant 0 : i32
    return %c0_i32, %c0_i32_0 : i32, i32
  }
  func.func @transform_3(%arg0: i32) -> (i32, i32) {
    %c0_i32 = arith.constant 0 : i32
    %c0_i32_0 = arith.constant 0 : i32
    %c0_i32_1 = arith.constant 0 : i32
    return %c0_i32, %c0_i32_0 : i32, i32
  }
  func.func @transform_4(%arg0: i32) -> (i32, i32) {
    %c0_i32 = arith.constant 0 : i32
    %c0_i32_0 = arith.constant 0 : i32
    %c0_i32_1 = arith.constant 0 : i32
    return %c0_i32, %c0_i32_0 : i32, i32
  }
  func.func @transform_5(%arg0: i32) -> (i32, i32) {
    %c0_i32 = arith.constant 0 : i32
    %c0_i32_0 = arith.constant 0 : i32
    %c0_i32_1 = arith.constant 0 : i32
    return %c0_i32, %c0_i32_0 : i32, i32
  }
  func.func @transform_6(%arg0: i32) -> (i32, i32) {
    %c0_i32 = arith.constant 0 : i32
    %c0_i32_0 = arith.constant 0 : i32
    %c0_i32_1 = arith.constant 0 : i32
    return %c0_i32, %c0_i32_0 : i32, i32
  }
  func.func @transform_7(%arg0: i32) -> (i32, i32, i32) {
    %c0_i32 = arith.constant 0 : i32
    %c0_i32_0 = arith.constant 0 : i32
    %c0_i32_1 = arith.constant 0 : i32
    return %arg0, %c0_i32, %c0_i32_0 : i32, i32, i32
  }
}

module attributes {stable_mosaic.version = 11 : i64} {
  func.func @qnetwork_kernel(%arg0: i32, %arg1: memref<16x32xbf16, #tpu.memory_space<vmem>>, %arg2: memref<256x16xbf16, #tpu.memory_space<vmem>>, %arg3: memref<256x1xf32, #tpu.memory_space<vmem>>, %arg4: memref<256x256xbf16, #tpu.memory_space<vmem>>, %arg5: memref<256x1xf32, #tpu.memory_space<vmem>>, %arg6: memref<256x1xf32, #tpu.memory_space<vmem>>, %arg7: memref<1x1xf32, #tpu.memory_space<vmem>>, %arg8: memref<1x1x32xf32, #tpu.memory_space<vmem>>) attributes {dimension_semantics = [#tpu.dimension_semantics<arbitrary>], iteration_bounds = array<i64: 1>, scalar_prefetch = 0 : i64, scratch_operands = 0 : i64, tpu.core_type = #tpu.core_type<tc>, window_params = [{transform_indices = @transform_0, window_bounds = array<i64: 16, 32>}, {pipeline_mode = #tpu.pipeline_mode<synchronous>, transform_indices = @transform_1, window_bounds = array<i64: 256, 16>}, {pipeline_mode = #tpu.pipeline_mode<synchronous>, transform_indices = @transform_2, window_bounds = array<i64: 256, 1>}, {pipeline_mode = #tpu.pipeline_mode<synchronous>, transform_indices = @transform_3, window_bounds = array<i64: 256, 256>}, {pipeline_mode = #tpu.pipeline_mode<synchronous>, transform_indices = @transform_4, window_bounds = array<i64: 256, 1>}, {pipeline_mode = #tpu.pipeline_mode<synchronous>, transform_indices = @transform_5, window_bounds = array<i64: 256, 1>}, {pipeline_mode = #tpu.pipeline_mode<synchronous>, transform_indices = @transform_6, window_bounds = array<i64: 1, 1>}, {transform_indices = @transform_7, window_bounds = array<i64: 1, 1, 32>}]} {
    %c0 = arith.constant 0 : index
    %c0_0 = arith.constant 0 : index
    %0 = vector.load %arg1[%c0, %c0_0] : memref<16x32xbf16, #tpu.memory_space<vmem>>, vector<16x32xbf16>
    %c0_1 = arith.constant 0 : index
    %c0_2 = arith.constant 0 : index
    %1 = vector.load %arg2[%c0_1, %c0_2] : memref<256x16xbf16, #tpu.memory_space<vmem>>, vector<256x16xbf16>
    %cst = arith.constant dense<0.000000e+00> : vector<256x32xf32>
    %2 = tpu.matmul %1, %0, %cst {dimension_numbers = #tpu.dot_dimension_numbers<[1], [0], [0], [1], [0, 0, 1, 1], [], []>} : vector<256x16xbf16>, vector<16x32xbf16>, vector<256x32xf32> -> vector<256x32xf32>
    %c0_3 = arith.constant 0 : index
    %c0_4 = arith.constant 0 : index
    %3 = vector.load %arg3[%c0_3, %c0_4] : memref<256x1xf32, #tpu.memory_space<vmem>>, vector<256x1xf32>
    %4 = vector.broadcast %3 : vector<256x1xf32> to vector<256x32xf32>
    %5 = arith.addf %2, %4 : vector<256x32xf32>
    %cst_5 = arith.constant 0.000000e+00 : f32
    %6 = vector.broadcast %cst_5 : f32 to vector<256x32xf32>
    %7 = arith.maximumf %5, %6 : vector<256x32xf32>
    %c0_6 = arith.constant 0 : index
    %c0_7 = arith.constant 0 : index
    %8 = vector.load %arg4[%c0_6, %c0_7] : memref<256x256xbf16, #tpu.memory_space<vmem>>, vector<256x256xbf16>
    %9 = arith.truncf %7 : vector<256x32xf32> to vector<256x32xbf16>
    %cst_8 = arith.constant dense<0.000000e+00> : vector<256x32xf32>
    %10 = tpu.matmul %8, %9, %cst_8 {dimension_numbers = #tpu.dot_dimension_numbers<[1], [0], [0], [1], [0, 0, 1, 1], [], []>} : vector<256x256xbf16>, vector<256x32xbf16>, vector<256x32xf32> -> vector<256x32xf32>
    %c0_9 = arith.constant 0 : index
    %c0_10 = arith.constant 0 : index
    %11 = vector.load %arg5[%c0_9, %c0_10] : memref<256x1xf32, #tpu.memory_space<vmem>>, vector<256x1xf32>
    %12 = vector.broadcast %11 : vector<256x1xf32> to vector<256x32xf32>
    %13 = arith.addf %10, %12 : vector<256x32xf32>
    %cst_11 = arith.constant 0.000000e+00 : f32
    %14 = vector.broadcast %cst_11 : f32 to vector<256x32xf32>
    %15 = arith.maximumf %13, %14 : vector<256x32xf32>
    %c0_12 = arith.constant 0 : index
    %c0_13 = arith.constant 0 : index
    %16 = vector.load %arg6[%c0_12, %c0_13] : memref<256x1xf32, #tpu.memory_space<vmem>>, vector<256x1xf32>
    %17 = vector.broadcast %16 : vector<256x1xf32> to vector<256x32xf32>
    %18 = arith.mulf %15, %17 : vector<256x32xf32>
    %cst_14 = arith.constant dense<0.000000e+00> : vector<32xf32>
    %19 = vector.multi_reduction <add>, %18, %cst_14 [0] : vector<256x32xf32> to vector<32xf32>
    %20 = vector.shape_cast %19 : vector<32xf32> to vector<1x32xf32>
    %c0_15 = arith.constant 0 : index
    %c0_16 = arith.constant 0 : index
    %21 = vector.load %arg7[%c0_15, %c0_16] : memref<1x1xf32, #tpu.memory_space<vmem>>, vector<1x1xf32>
    %22 = vector.broadcast %21 : vector<1x1xf32> to vector<1x32xf32>
    %23 = arith.addf %20, %22 : vector<1x32xf32>
    %c0_17 = arith.constant 0 : index
    %c0_18 = arith.constant 0 : index
    %c0_19 = arith.constant 0 : index
    %24 = vector.load %arg8[%c0_17, %c0_18, %c0_19] : memref<1x1x32xf32, #tpu.memory_space<vmem>>, vector<1x1x32xf32>
    %25 = vector.shape_cast %24 : vector<1x1x32xf32> to vector<1x32xf32>
    %26 = vector.shape_cast %23 : vector<1x32xf32> to vector<1x1x32xf32>
    tpu.vector_store %arg8[%c0_17, %c0_18, %c0_19], %26 {strides = array<i32>} : memref<1x1x32xf32, #tpu.memory_space<vmem>>, vector<1x1x32xf32>,
    return
  }
  func.func @transform_0(%arg0: i32) -> (i32, i32) {
    %c0_i32 = arith.constant 0 : i32
    %c0_i32_0 = arith.constant 0 : i32
    return %c0_i32, %arg0 : i32, i32
  }
  func.func @transform_1(%arg0: i32) -> (i32, i32) {
    %c0_i32 = arith.constant 0 : i32
    %c0_i32_0 = arith.constant 0 : i32
    %c0_i32_1 = arith.constant 0 : i32
    return %c0_i32, %c0_i32_0 : i32, i32
  }
  func.func @transform_2(%arg0: i32) -> (i32, i32) {
    %c0_i32 = arith.constant 0 : i32
    %c0_i32_0 = arith.constant 0 : i32
    %c0_i32_1 = arith.constant 0 : i32
    return %c0_i32, %c0_i32_0 : i32, i32
  }
  func.func @transform_3(%arg0: i32) -> (i32, i32) {
    %c0_i32 = arith.constant 0 : i32
    %c0_i32_0 = arith.constant 0 : i32
    %c0_i32_1 = arith.constant 0 : i32
    return %c0_i32, %c0_i32_0 : i32, i32
  }
  func.func @transform_4(%arg0: i32) -> (i32, i32) {
    %c0_i32 = arith.constant 0 : i32
    %c0_i32_0 = arith.constant 0 : i32
    %c0_i32_1 = arith.constant 0 : i32
    return %c0_i32, %c0_i32_0 : i32, i32
  }
  func.func @transform_5(%arg0: i32) -> (i32, i32) {
    %c0_i32 = arith.constant 0 : i32
    %c0_i32_0 = arith.constant 0 : i32
    %c0_i32_1 = arith.constant 0 : i32
    return %c0_i32, %c0_i32_0 : i32, i32
  }
  func.func @transform_6(%arg0: i32) -> (i32, i32) {
    %c0_i32 = arith.constant 0 : i32
    %c0_i32_0 = arith.constant 0 : i32
    %c0_i32_1 = arith.constant 0 : i32
    return %c0_i32, %c0_i32_0 : i32, i32
  }
  func.func @transform_7(%arg0: i32) -> (i32, i32, i32) {
    %c0_i32 = arith.constant 0 : i32
    %c0_i32_0 = arith.constant 0 : i32
    %c0_i32_1 = arith.constant 0 : i32
    return %arg0, %c0_i32, %c0_i32_0 : i32, i32, i32
  }
}

</mosaic_0001>

<bundles_post_ra>
// kernel: tpu_custom_call.1
= control target key start
LH: loop header
LB: loop body
LE: loop exit
PB: predicated region body
PF: predicated region fallthrough
CT: control target
= control target key end

     0   :  { %s2611_s0 = inlined_call_operand.vmem [shape: bf16[16,32], index: 0, kind: input, shape index: {}]   ;;  %s2612_s1 = inlined_call_operand.vmem [shape: bf16[256,16], index: 1, kind: input, shape index: {}]   ;;  %s2613_s2 = inlined_call_operand.vmem [shape: f32[256,1], index: 2, kind: input, shape index: {}]   ;;  %s2614_s3 = inlined_call_operand.vmem [shape: bf16[256,256], index: 3, kind: input, shape index: {}]   ;;  %s2615_s4 = inlined_call_operand.vmem [shape: f32[256,1], index: 4, kind: input, shape index: {}]   ;;  %s2616_s5 = inlined_call_operand.vmem [shape: f32[256,1], index: 5, kind: input, shape index: {}]   ;;  %s2617_s6 = inlined_call_operand.<no memory space> [shape: f32[1,1], index: 6, kind: input, shape index: {}]   ;;  %s2618_s7 = inlined_call_operand.hbm [shape: f32[1,1,32], index: 7, kind: output, shape index: {}]  }
   0x1   :  { %v12_v0 = vstv %s2617_s6 }
   0x2   :  { %13 = vst [vmem:[#allocation2] sm:$0x1] %v12_v0 }
   0x3   :  { %v80_v1 = vld [vmem:[%s2613_s2 + $0x80] sm:$0xff]  ;;  %v1835_v3 = vmov 0   ;;  %v81_v5 = vld [vmem:[%s2613_s2 + $0x88] sm:$0xff]  ;;  %vm342_vm0 = vcmask 130048   ;;  %v1749_v9 = vld [vmem:[%s2612_s1 + $0x10] sm:$0xff]  }
   0x4   :  { %v64_v2 = vld [vmem:[%s2613_s2] sm:$0xff]  ;;  %1745 = vset.pattern.permute.xlu1 %v1835_v3  ;;  %1744 = vset.pattern.permute.xlu0 %v1835_v3  ;;  %v65_v6 = vld [vmem:[%s2613_s2 + $0x8] sm:$0xff]  ;;  %v82_v10 = vld [vmem:[%s2613_s2 + $0x90] sm:$0xff] }
   0x5   :  { %v1746_v4 = vld [vmem:[%s2611_s0] sm:$0xff]   ;;  %178 = vperm.xlu0 %1744, %v80_v1   ;;  %98 = vperm.xlu1 %1745, %v64_v2   ;;  %v1748_v8 = vld [vmem:[%s2612_s1 + $0x8] sm:$0xff]   ;;  %v83_v11 = vld [vmem:[%s2613_s2 + $0x98] sm:$0xff] }
   0x6   :  { %1692 = vmatprep.subr.bf16.mxu0 %v1746_v4  ;;  %v1747_v7 = vld [vmem:[%s2612_s1] sm:$0xff]   ;;  %v66_v12 = vld [vmem:[%s2613_s2 + $0x10] sm:$0xff]  ;;  %v67_v13 = vld [vmem:[%s2613_s2 + $0x18] sm:$0xff] }
   0x7   :  { %1693 = vmatpush3.bf16.msra.mxu0 %v1746_v4  ;;  %1694 = vmatprep.mubr.msk.bf16.mxu0 %vm342_vm0, %v1747_v7  ;;  %v1750_v14 = vld [vmem:[%s2612_s1 + $0x18] sm:$0xff]   ;;  %v1751_v15 = vld [vmem:[%s2612_s1 + $0x20] sm:$0xff]   ;;  %v85_v17 = vld [vmem:[%s2613_s2 + $0xa8] sm:$0xff] }
   0x8   :  { %v84_v16 = vld [vmem:[%s2613_s2 + $0xa0] sm:$0xff]  ;;  %v69_v19 = vld [vmem:[%s2613_s2 + $0x28] sm:$0xff]  ;;  %v1753_v21 = vld [vmem:[%s2612_s1 + $0x30] sm:$0xff]  }
   0x9   :  { %183 = vperm.xlu0 %1744, %v81_v5   ;;  %103 = vperm.xlu1 %1745, %v65_v6   ;;  %v68_v18 = vld [vmem:[%s2613_s2 + $0x20] sm:$0xff]  ;;  %v1752_v20 = vld [vmem:[%s2612_s1 + $0x28] sm:$0xff]   ;;  %v86_v22 = vld [vmem:[%s2613_s2 + $0xb0] sm:$0xff] }
   0xa   :  { %1695 = vmatmul.mubr.msk.bf16.vlgmr.msra.gmra.mrb[0].mxu0 %vm342_vm0, %v1748_v8  ;;  %v87_v23 = vld [vmem:[%s2613_s2 + $0xb8] sm:$0xff]  ;;  %v70_v24 = vld [vmem:[%s2613_s2 + $0x30] sm:$0xff]  ;;  %v1755_v27 = vld [vmem:[%s2612_s1 + $0x40] sm:$0xff]  }
   0xb   :  { %1698 = vmatprep.mubr.msk.bf16.mxu0 %vm342_vm0, %v1749_v9  ;;  %v71_v25 = vld [vmem:[%s2613_s2 + $0x38] sm:$0xff]  ;;  %v88_v28 = vld [vmem:[%s2613_s2 + $0xc0] sm:$0xff]  ;;  %v89_v29 = vld [vmem:[%s2613_s2 + $0xc8] sm:$0xff] }
   0xc   :  { %v1754_v26 = vld [vmem:[%s2612_s1 + $0x38] sm:$0xff]   ;;  %v72_v30 = vld [vmem:[%s2613_s2 + $0x40] sm:$0xff]  ;;  %v73_v31 = vld [vmem:[%s2613_s2 + $0x48] sm:$0xff] }
   0xd   :  { %188 = vperm.xlu0 %1744, %v82_v10   ;;  %193 = vperm.xlu1 %1745, %v83_v11   ;;  %v1756_v32 = vld [vmem:[%s2612_s1 + $0x48] sm:$0xff]   ;;  %v1757_v33 = vld [vmem:[%s2612_s1 + $0x50] sm:$0xff]   ;;  %v91_v35 = vld [vmem:[%s2613_s2 + $0xd8] sm:$0xff] }
   0xe   :  { %v90_v34 = vld [vmem:[%s2613_s2 + $0xd0] sm:$0xff]  ;;  %v75_v37 = vld [vmem:[%s2613_s2 + $0x58] sm:$0xff]  ;;  %v1759_v39 = vld [vmem:[%s2612_s1 + $0x60] sm:$0xff]  }
   0xf   :  { %v74_v36 = vld [vmem:[%s2613_s2 + $0x50] sm:$0xff]  ;;  %v1758_v38 = vld [vmem:[%s2612_s1 + $0x58] sm:$0xff]   ;;  %v92_v40 = vld [vmem:[%s2613_s2 + $0xe0] sm:$0xff] }
  0x10   :  { %v93_v41 = vld [vmem:[%s2613_s2 + $0xe8] sm:$0xff]  ;;  %v76_v42 = vld [vmem:[%s2613_s2 + $0x60] sm:$0xff]  ;;  %v1761_v45 = vld [vmem:[%s2612_s1 + $0x70] sm:$0xff]  }
  0x11   :  { %108 = vperm.xlu0 %1744, %v66_v12   ;;  %113 = vperm.xlu1 %1745, %v67_v13   ;;  %v77_v43 = vld [vmem:[%s2613_s2 + $0x68] sm:$0xff]  ;;  %v94_v46 = vld [vmem:[%s2613_s2 + $0xf0] sm:$0xff]  ;;  %v95_v47 = vld [vmem:[%s2613_s2 + $0xf8] sm:$0xff] }
  0x12   :  { %1699 = vmatmul.mubr.msk.bf16.gmra.mrb[4].mxu0 %vm342_vm0, %v1750_v14  ;;  %v1760_v44 = vld [vmem:[%s2612_s1 + $0x68] sm:$0xff]   ;;  %v78_v48 = vld [vmem:[%s2613_s2 + $0x70] sm:$0xff]  ;;  %v79_v49 = vld [vmem:[%s2613_s2 + $0x78] sm:$0xff] }
  0x13   :  { %1702 = vmatprep.mubr.msk.bf16.mxu0 %vm342_vm0, %v1751_v15  ;;  %v1762_v50 = vld [vmem:[%s2612_s1 + $0x78] sm:$0xff]  }
  0x15   :  { %198 = vperm.xlu0 %1744, %v84_v16   ;;  %203 = vperm.xlu1 %1745, %v85_v17  }
  0x19   :  { %118 = vperm.xlu0 %1744, %v68_v18   ;;  %123 = vperm.xlu1 %1745, %v69_v19  }
  0x1a   :  { %1703 = vmatmul.mubr.msk.bf16.gmra.mrb[8].mxu0 %vm342_vm0, %v1752_v20 }
  0x1b   :  { %1706 = vmatprep.mubr.msk.bf16.mxu0 %vm342_vm0, %v1753_v21 }
  0x1d   :  { %208 = vperm.xlu0 %1744, %v86_v22   ;;  %213 = vperm.xlu1 %1745, %v87_v23  }
  0x21   :  { %128 = vperm.xlu0 %1744, %v70_v24   ;;  %133 = vperm.xlu1 %1745, %v71_v25  }
  0x22   :  { %1707 = vmatmul.mubr.msk.bf16.gmra.mrb[12].mxu0 %vm342_vm0, %v1754_v26 }
  0x23   :  { %1710 = vmatprep.mubr.msk.bf16.mxu0 %vm342_vm0, %v1755_v27 }
  0x25   :  { %218 = vperm.xlu0 %1744, %v88_v28   ;;  %223 = vperm.xlu1 %1745, %v89_v29  }
  0x29   :  { %138 = vperm.xlu0 %1744, %v72_v30   ;;  %143 = vperm.xlu1 %1745, %v73_v31  }
  0x2a   :  { %1711 = vmatmul.mubr.msk.bf16.gmra.mrb[16].mxu0 %vm342_vm0, %v1756_v32 }
  0x2b   :  { %1714 = vmatprep.mubr.msk.bf16.mxu0 %vm342_vm0, %v1757_v33 }
  0x2d   :  { %228 = vperm.xlu0 %1744, %v90_v34   ;;  %233 = vperm.xlu1 %1745, %v91_v35  }
  0x31   :  { %148 = vperm.xlu0 %1744, %v74_v36   ;;  %153 = vperm.xlu1 %1745, %v75_v37  }
  0x32   :  { %1715 = vmatmul.mubr.msk.bf16.gmra.mrb[20].mxu0 %vm342_vm0, %v1758_v38 }
  0x33   :  { %1718 = vmatprep.mubr.msk.bf16.mxu0 %vm342_vm0, %v1759_v39 }
  0x35   :  { %238 = vperm.xlu0 %1744, %v92_v40   ;;  %243 = vperm.xlu1 %1745, %v93_v41  }
  0x39   :  { %158 = vperm.xlu0 %1744, %v76_v42   ;;  %163 = vperm.xlu1 %1745, %v77_v43  }
  0x3a   :  { %1719 = vmatmul.mubr.msk.bf16.gmra.mrb[24].mxu0 %vm342_vm0, %v1760_v44 }
  0x3b   :  { %1722 = vmatprep.mubr.msk.bf16.mxu0 %vm342_vm0, %v1761_v45 }
  0x3d   :  { %248 = vperm.xlu0 %1744, %v94_v46   ;;  %253 = vperm.xlu1 %1745, %v95_v47  }
  0x3e   :  { %14 = vsyncpa [#allocation4], 0  ;;  %v632_v51 = vld [vmem:[%s2615_s4] sm:$0xff]  ;;  %v633_v52 = vld [vmem:[%s2615_s4 + $0x8] sm:$0xff]  ;;  %vm1401_vm1 = vcmask 261120   ;;  %vm1482_vm2 = vcmask 253952  }
  0x3f   :  { %v634_v53 = vld [vmem:[%s2615_s4 + $0x10] sm:$0xff]  ;;  %v635_v54 = vld [vmem:[%s2615_s4 + $0x18] sm:$0xff]  ;;  %v636_v55 = vld [vmem:[%s2615_s4 + $0x20] sm:$0xff] }
  0x40   :  { %v637_v56 = vld [vmem:[%s2615_s4 + $0x28] sm:$0xff]  ;;  %v638_v57 = vld [vmem:[%s2615_s4 + $0x30] sm:$0xff]  ;;  %v639_v58 = vld [vmem:[%s2615_s4 + $0x38] sm:$0xff] }
  0x41   :  { %168 = vperm.xlu0 %1744, %v78_v48   ;;  %173 = vperm.xlu1 %1745, %v79_v49   ;;  %v640_v59 = vld [vmem:[%s2615_s4 + $0x40] sm:$0xff]  ;;  %v641_v60 = vld [vmem:[%s2615_s4 + $0x48] sm:$0xff]  ;;  %v642_v61 = vld [vmem:[%s2615_s4 + $0x50] sm:$0xff] }
  0x42   :  { %1723 = vmatmul.mubr.msk.bf16.gmra.mrb[28].mxu0 %vm342_vm0, %v1762_v50  ;;  %v643_v62 = vld [vmem:[%s2615_s4 + $0x58] sm:$0xff]  ;;  %v644_v63 = vld [vmem:[%s2615_s4 + $0x60] sm:$0xff]  ;;  %v645_v0 = vld [vmem:[%s2615_s4 + $0x68] sm:$0xff] }
  0x43   :  { %v646_v1 = vld [vmem:[%s2615_s4 + $0x70] sm:$0xff]  ;;  %v647_v2 = vld [vmem:[%s2615_s4 + $0x78] sm:$0xff]  ;;  %v648_v3 = vld [vmem:[%s2615_s4 + $0x80] sm:$0xff] }
  0x44   :  { %v649_v4 = vld [vmem:[%s2615_s4 + $0x88] sm:$0xff]  ;;  %v650_v5 = vld [vmem:[%s2615_s4 + $0x90] sm:$0xff]  ;;  %v651_v6 = vld [vmem:[%s2615_s4 + $0x98] sm:$0xff] }
  0x45   :  { %666 = vperm.xlu0 %1744, %v632_v51   ;;  %671 = vperm.xlu1 %1745, %v633_v52   ;;  %v652_v7 = vld [vmem:[%s2615_s4 + $0xa0] sm:$0xff]  ;;  %v653_v8 = vld [vmem:[%s2615_s4 + $0xa8] sm:$0xff]  ;;  %v654_v9 = vld [vmem:[%s2615_s4 + $0xb0] sm:$0xff] }
  0x46   :  { %v655_v10 = vld [vmem:[%s2615_s4 + $0xb8] sm:$0xff]  ;;  %v656_v11 = vld [vmem:[%s2615_s4 + $0xc0] sm:$0xff]  ;;  %v657_v12 = vld [vmem:[%s2615_s4 + $0xc8] sm:$0xff] }
  0x47   :  { %v658_v13 = vld [vmem:[%s2615_s4 + $0xd0] sm:$0xff]  ;;  %v659_v14 = vld [vmem:[%s2615_s4 + $0xd8] sm:$0xff]  ;;  %v660_v15 = vld [vmem:[%s2615_s4 + $0xe0] sm:$0xff] }
  0x48   :  { %v1177_v16 = vld [vmem:[%s2616_s5] sm:$0xff]  ;;  %v1178_v17 = vld [vmem:[%s2616_s5 + $0x8] sm:$0xff]  ;;  %v1179_v18 = vld [vmem:[%s2616_s5 + $0x10] sm:$0xff] }
  0x49   :  { %676 = vperm.xlu0 %1744, %v634_v53   ;;  %681 = vperm.xlu1 %1745, %v635_v54   ;;  %v1180_v19 = vld [vmem:[%s2616_s5 + $0x18] sm:$0xff]  ;;  %v1181_v20 = vld [vmem:[%s2616_s5 + $0x20] sm:$0xff]  ;;  %v1182_v21 = vld [vmem:[%s2616_s5 + $0x28] sm:$0xff] }
  0x4a   :  { %v1183_v22 = vld [vmem:[%s2616_s5 + $0x30] sm:$0xff]  ;;  %v1184_v23 = vld [vmem:[%s2616_s5 + $0x38] sm:$0xff]  ;;  %v1185_v24 = vld [vmem:[%s2616_s5 + $0x40] sm:$0xff] }
  0x4b   :  { %v1186_v25 = vld [vmem:[%s2616_s5 + $0x48] sm:$0xff]  ;;  %v1187_v26 = vld [vmem:[%s2616_s5 + $0x50] sm:$0xff]  ;;  %v1188_v27 = vld [vmem:[%s2616_s5 + $0x58] sm:$0xff] }
  0x4c   :  { %v1189_v28 = vld [vmem:[%s2616_s5 + $0x60] sm:$0xff]  ;;  %v1190_v29 = vld [vmem:[%s2616_s5 + $0x68] sm:$0xff]  ;;  %v1191_v30 = vld [vmem:[%s2616_s5 + $0x70] sm:$0xff] }
  0x4d   :  { %686 = vperm.xlu0 %1744, %v636_v55   ;;  %691 = vperm.xlu1 %1745, %v637_v56   ;;  %v1192_v31 = vld [vmem:[%s2616_s5 + $0x78] sm:$0xff]  ;;  %v1193_v32 = vld [vmem:[%s2616_s5 + $0x80] sm:$0xff]  ;;  %v1194_v35 = vld [vmem:[%s2616_s5 + $0x88] sm:$0xff] }
  0x4e   :  { %v1195_v36 = vld [vmem:[%s2616_s5 + $0x90] sm:$0xff]  ;;  %v1196_v38 = vld [vmem:[%s2616_s5 + $0x98] sm:$0xff]  ;;  %v1197_v39 = vld [vmem:[%s2616_s5 + $0xa0] sm:$0xff] }
  0x4f   :  { %v1765_v41 = vld [vmem:[%s2614_s3 + $0x4] ss:$8 sps:$4 sm:$0xff]   ;;  %v1199_v43 = vld [vmem:[%s2616_s5 + $0xb0] sm:$0xff]  ;;  %v1200_v47 = vld [vmem:[%s2616_s5 + $0xb8] sm:$0xff] }
  0x50   :  { %v1198_v42 = vld [vmem:[%s2616_s5 + $0xa8] sm:$0xff]  ;;  %v1768_v44 = vld [vmem:[%s2614_s3 + $0x54] ss:$8 sps:$4 sm:$0xff]   ;;  %1016 = vmatprep.mubr.bf16.mxu0 %v1765_v41  ;;  %v1201_v48 = vld [vmem:[%s2616_s5 + $0xc0] sm:$0xff] }
  0x51   :  { %696 = vperm.xlu0 %1744, %v638_v57   ;;  %701 = vperm.xlu1 %1745, %v639_v58   ;;  %v1202_v50 = vld [vmem:[%s2616_s5 + $0xc8] sm:$0xff]  ;;  %v1203_v51 = vld [vmem:[%s2616_s5 + $0xd0] sm:$0xff]  ;;  %v1204_v54 = vld [vmem:[%s2616_s5 + $0xd8] sm:$0xff] }
  0x52   :  { %1056 = vmatprep.mubr.bf16.mxu1 %v1768_v44  ;;  %v661_v53 = vld [vmem:[%s2615_s4 + $0xe8] sm:$0xff]  ;;  %v662_v57 = vld [vmem:[%s2615_s4 + $0xf0] sm:$0xff]  ;;  %v1205_v58 = vld [vmem:[%s2616_s5 + $0xe0] sm:$0xff] }
  0x55   :  { %706 = vperm.xlu0 %1744, %v640_v59   ;;  %711 = vperm.xlu1 %1745, %v641_v60   ;;  %v663_v60 = vld [vmem:[%s2615_s4 + $0xf8] sm:$0xff] }
  0x59   :  { %716 = vperm.xlu0 %1744, %v642_v61   ;;  %721 = vperm.xlu1 %1745, %v643_v62   ;;  %v1206_v61 = vld [vmem:[%s2616_s5 + $0xe8] sm:$0xff] }
  0x5d   :  { %726 = vperm.xlu0 %1744, %v644_v63   ;;  %731 = vperm.xlu1 %1745, %v645_v0   ;;  %v1207_v63 = vld [vmem:[%s2616_s5 + $0xf0] sm:$0xff]  ;;  %v1208_v0 = vld [vmem:[%s2616_s5 + $0xf8] sm:$0xff] }
  0x61   :  { %736 = vperm.xlu0 %1744, %v646_v1   ;;  %741 = vperm.xlu1 %1745, %v647_v2  }
  0x65   :  { %746 = vperm.xlu0 %1744, %v648_v3   ;;  %751 = vperm.xlu1 %1745, %v649_v4   ;;  %v1471_v3 = vld [vmem:[#allocation2] sm:$0x1] }
  0x69   :  { %756 = vperm.xlu0 %1744, %v650_v5   ;;  %761 = vperm.xlu1 %1745, %v651_v6  }
  0x6d   :  { %766 = vperm.xlu0 %1744, %v652_v7   ;;  %771 = vperm.xlu1 %1745, %v653_v8  }
  0x71   :  { %776 = vperm.xlu0 %1744, %v654_v9   ;;  %781 = vperm.xlu1 %1745, %v655_v10  }
  0x75   :  { %786 = vperm.xlu0 %1744, %v656_v11   ;;  %791 = vperm.xlu1 %1745, %v657_v12  }
  0x79   :  { %796 = vperm.xlu0 %1744, %v658_v13   ;;  %801 = vperm.xlu1 %1745, %v659_v14  }
  0x7d   :  { %806 = vperm.xlu0 %1744, %v660_v15   ;;  %1211 = vperm.xlu1 %1745, %v1177_v16  }
  0x81   :  { %1216 = vperm.xlu0 %1744, %v1178_v17   ;;  %1221 = vperm.xlu1 %1745, %v1179_v18  }
  0x84   :  { %v2181_v33 = vpop.permute.xlu0 %178  ;;  %v2183_v34 = vpop.permute.xlu1 %98 }
  0x85   :  { %1226 = vperm.xlu0 %1744, %v1180_v19   ;;  %1231 = vperm.xlu1 %1745, %v1181_v20  }
  0x88   :  { %v2191_v37 = vpop.permute.xlu0 %183  ;;  %v2199_v40 = vpop.permute.xlu1 %103 }
  0x89   :  { %1236 = vperm.xlu0 %1744, %v1182_v21   ;;  %1241 = vperm.xlu1 %1745, %v1183_v22  }
  0x8c   :  { %v2213_v45 = vpop.permute.xlu0 %188  ;;  %v2215_v46 = vpop.permute.xlu1 %193 }
  0x8d   :  { %1246 = vperm.xlu0 %1744, %v1184_v23   ;;  %1251 = vperm.xlu1 %1745, %v1185_v24  }
  0x90   :  { %v109_v49 = vpop.permute.xlu0 %108  ;;  %v114_v52 = vpop.permute.xlu1 %113 }
  0x91   :  { %1256 = vperm.xlu0 %1744, %v1186_v25   ;;  %1261 = vperm.xlu1 %1745, %v1187_v26  }
  0x94   :  { %v2235_v55 = vpop.permute.xlu0 %198  ;;  %v2237_v56 = vpop.permute.xlu1 %203 }
  0x95   :  { %1266 = vperm.xlu0 %1744, %v1188_v27   ;;  %1271 = vperm.xlu1 %1745, %v1189_v28  }
  0x98   :  { %v119_v59 = vpop.permute.xlu0 %118  ;;  %v124_v62 = vpop.permute.xlu1 %123 }
  0x99   :  { %1276 = vperm.xlu0 %1744, %v1190_v29   ;;  %1281 = vperm.xlu1 %1745, %v1191_v30  }
  0x9c   :  { %v2257_v1 = vpop.permute.xlu0 %208  ;;  %v2259_v2 = vpop.permute.xlu1 %213 }
  0x9d   :  { %1286 = vperm.xlu0 %1744, %v1192_v31   ;;  %1291 = vperm.xlu1 %1745, %v1193_v32  }
  0xa0   :  { %v129_v4 = vpop.permute.xlu0 %128  ;;  %v134_v5 = vpop.permute.xlu1 %133 }
  0xa1   :  { %1296 = vperm.xlu0 %1744, %v1194_v35   ;;  %1301 = vperm.xlu1 %1745, %v1195_v36  }
  0xa4   :  { %v2261_v6 = vpop.permute.xlu0 %218  ;;  %v2263_v7 = vpop.permute.xlu1 %223 }
  0xa5   :  { %1306 = vperm.xlu0 %1744, %v1196_v38   ;;  %1311 = vperm.xlu1 %1745, %v1197_v39  }
  0xa8   :  { %v139_v8 = vpop.permute.xlu0 %138  ;;  %v144_v9 = vpop.permute.xlu1 %143 }
  0xa9   :  { %1316 = vperm.xlu0 %1744, %v1198_v42   ;;  %1321 = vperm.xlu1 %1745, %v1199_v43  }
  0xac   :  { %v2265_v10 = vpop.permute.xlu0 %228  ;;  %v2267_v11 = vpop.permute.xlu1 %233 }
  0xad   :  { %1326 = vperm.xlu0 %1744, %v1200_v47   ;;  %1331 = vperm.xlu1 %1745, %v1201_v48  }
  0xb0   :  { %v149_v12 = vpop.permute.xlu0 %148  ;;  %v154_v16 = vpop.permute.xlu1 %153 }
  0xb1   :  { %1336 = vperm.xlu0 %1744, %v1202_v50   ;;  %1341 = vperm.xlu1 %1745, %v1203_v51  }
  0xb4   :  { %v2271_v24 = vpop.permute.xlu0 %238  ;;  %v2275_v28 = vpop.permute.xlu1 %243 }
  0xb5   :  { %811 = vperm.xlu0 %1744, %v661_v53   ;;  %1346 = vperm.xlu1 %1745, %v1204_v54  }
  0xb8   :  { %v159_v38 = vpop.permute.xlu0 %158  ;;  %v164_v43 = vpop.permute.xlu1 %163 }
  0xb9   :  { %816 = vperm.xlu0 %1744, %v662_v57   ;;  %1351 = vperm.xlu1 %1745, %v1205_v58  }
  0xbc   :  { %v2283_v53 = vpop.permute.xlu0 %248 }
  0xbd   :  { %821 = vperm.xlu0 %1744, %v663_v60   ;;  %1356 = vperm.xlu1 %1745, %v1206_v61  }
  0xc1   :  { %1361 = vperm.xlu0 %1744, %v1207_v63   ;;  %1366 = vperm.xlu1 %1745, %v1208_v0  }
  0xc5   :  { %1474 = vperm.xlu0 %1744, %v1471_v3  }
  0xdd   :  { %v1696_v13 = vpop.f32.mrb[0].mxu0 }
  0xde   :  { %v434_v14 = vadd.f32 %v1696_v13, %v109_v49  ;;  %v425_v15 = vpop.f32.mrb[1].mxu0 }
  0xdf   :  { %v1697_v17 = vpop.f32.mrb[2].mxu0  ;;  %v426_v18 = vadd.f32 %v425_v15, %v2183_v34 }
  0xe0   :  { %v437_v19 = vadd.f32 %v1697_v17, %v114_v52  ;;  %v428_v20 = vpop.f32.mrb[3].mxu0  ;;  %v554_v21 = vmax.f32 %v434_v14, 0.0 }
  0xe1   :  { %v429_v23 = vadd.f32 %v428_v20, %v2199_v40  ;;  %v552_v25 = vmax.f32 %v426_v18, 0.0 }
  0xe2   :  { %v555_v22 = vmax.f32 %v437_v19, 0.0 }
  0xe3   :  { %v553_v27 = vmax.f32 %v429_v23, 0.0 }
  0xe4   :  { %v2273_v26 = vpack.c.bf16 %v555_v22, %v554_v21 }
  0xe5   :  { %v1700_v29 = vpop.f32.mrb[4].mxu0  ;;  %v2277_v30 = vpack.c.bf16 %v553_v27, %v552_v25 }
  0xe6   :  { %v450_v31 = vadd.f32 %v1700_v29, %v129_v4  ;;  %v441_v32 = vpop.f32.mrb[5].mxu0 }
  0xe7   :  { %v1701_v34 = vpop.f32.mrb[6].mxu0  ;;  %v442_v35 = vadd.f32 %v441_v32, %v119_v59  ;;  %v2285_v59 = vpop.permute.xlu1 %253 }
  0xe8   :  { %v453_v36 = vadd.f32 %v1701_v34, %v134_v5  ;;  %v444_v39 = vpop.f32.mrb[7].mxu0  ;;  %v558_v41 = vmax.f32 %v450_v31, 0.0  ;;  %v169_v5 = vpop.permute.xlu0 %168 }
  0xe9   :  { %v445_v42 = vadd.f32 %v444_v39, %v124_v62  ;;  %v556_v44 = vmax.f32 %v442_v35, 0.0 }
  0xea   :  { %v559_v40 = vmax.f32 %v453_v36, 0.0 }
  0xeb   :  { %v557_v48 = vmax.f32 %v445_v42, 0.0  ;;  %v174_v17 = vpop.permute.xlu1 %173 }
  0xec   :  { %v2279_v47 = vpack.c.bf16 %v559_v40, %v558_v41 }
  0xed   :  { %v1704_v49 = vpop.f32.mrb[8].mxu0  ;;  %v2281_v50 = vpack.c.bf16 %v557_v48, %v556_v44 }
  0xee   :  { %v466_v51 = vadd.f32 %v1704_v49, %v149_v12  ;;  %v457_v52 = vpop.f32.mrb[9].mxu0 }
  0xef   :  { %v1705_v54 = vpop.f32.mrb[10].mxu0  ;;  %v458_v57 = vadd.f32 %v457_v52, %v139_v8 }
  0xf0   :  { %v469_v58 = vadd.f32 %v1705_v54, %v154_v16  ;;  %v460_v60 = vpop.f32.mrb[11].mxu0  ;;  %v562_v61 = vmax.f32 %v466_v51, 0.0 }
  0xf1   :  { %v461_v63 = vadd.f32 %v460_v60, %v144_v9  ;;  %v560_v0 = vmax.f32 %v458_v57, 0.0 }
  0xf2   :  { %v563_v62 = vmax.f32 %v469_v58, 0.0 }
  0xf3   :  { %v561_v4 = vmax.f32 %v461_v63, 0.0 }
  0xf4   :  { %v2287_v3 = vpack.c.bf16 %v563_v62, %v562_v61 }
  0xf5   :  { %v1708_v13 = vpop.f32.mrb[12].mxu0  ;;  %v2289_v14 = vpack.c.bf16 %v561_v4, %v560_v0 }
  0xf6   :  { %v482_v12 = vadd.f32 %v1708_v13, %v169_v5  ;;  %v473_v15 = vpop.f32.mrb[13].mxu0 }
  0xf7   :  { %v1709_v18 = vpop.f32.mrb[14].mxu0  ;;  %v474_v8 = vadd.f32 %v473_v15, %v159_v38 }
  0xf8   :  { %v485_v16 = vadd.f32 %v1709_v18, %v174_v17  ;;  %v476_v19 = vpop.f32.mrb[15].mxu0  ;;  %v566_v20 = vmax.f32 %v482_v12, 0.0 }
  0xf9   :  { %v477_v22 = vadd.f32 %v476_v19, %v164_v43  ;;  %v564_v23 = vmax.f32 %v474_v8, 0.0 }
  0xfa   :  { %v567_v21 = vmax.f32 %v485_v16, 0.0 }
  0xfb   :  { %v565_v25 = vmax.f32 %v477_v22, 0.0 }
  0xfc   :  { %v2291_v9 = vpack.c.bf16 %v567_v21, %v566_v20 }
  0xfd   :  { %v1712_v27 = vpop.f32.mrb[16].mxu0  ;;  %v2293_v29 = vpack.c.bf16 %v565_v25, %v564_v23  ;;  %v1773_v23 = vld [vmem:[%s2614_s3 + $0x10] ss:$8 sps:$4 sm:$0xff]   ;;  %v1775_v25 = vld [vmem:[%s2614_s3 + $0x24] ss:$8 sps:$4 sm:$0xff]  }
  0xfe   :  { %v498_v31 = vadd.f32 %v1712_v27, %v2213_v45  ;;  %v489_v32 = vpop.f32.mrb[17].mxu0  ;;  %v1777_v27 = vld [vmem:[%s2614_s3 + $0x74] ss:$8 sps:$4 sm:$0xff]  }
  0xff   :  { %v1713_v34 = vpop.f32.mrb[18].mxu0  ;;  %v490_v35 = vadd.f32 %v489_v32, %v2181_v33  ;;  %v1781_v32 = vld [vmem:[%s2614_s3 + $0x34] ss:$8 sps:$4 sm:$0xff]  }
 0x100   :  { %v501_v36 = vadd.f32 %v1713_v34, %v2215_v46  ;;  %v492_v38 = vpop.f32.mrb[19].mxu0  ;;  %v570_v39 = vmax.f32 %v498_v31, 0.0  ;;  %v1780_v31 = vld [vmem:[%s2614_s3 + $0x70] ss:$8 sps:$4 sm:$0xff]   ;;  %v1783_v34 = vld [vmem:[%s2614_s3 + $0x84] ss:$8 sps:$4 sm:$0xff]  }
 0x101   :  { %v493_v40 = vadd.f32 %v492_v38, %v2191_v37  ;;  %v568_v42 = vmax.f32 %v490_v35, 0.0  ;;  %v1785_v35 = vld [vmem:[%s2614_s3 + $0x30] ss:$8 sps:$4 sm:$0xff]   ;;  %v1787_v38 = vld [vmem:[%s2614_s3 + $0x44] ss:$8 sps:$4 sm:$0xff]  }
 0x102   :  { %v571_v41 = vmax.f32 %v501_v36, 0.0  ;;  %v1786_v36 = vld [vmem:[%s2614_s3 + $0x80] ss:$8 sps:$4 sm:$0xff]  }
 0x103   :  { %v569_v44 = vmax.f32 %v493_v40, 0.0  ;;  %v1792_v40 = vld [vmem:[%s2614_s3 + $0x90] ss:$8 sps:$4 sm:$0xff]  }
 0x104   :  { %v625_v43 = vpack.c.bf16 %v571_v41, %v570_v39  ;;  %v1789_v39 = vld [vmem:[%s2614_s3 + $0x94] ss:$8 sps:$4 sm:$0xff]   ;;  %v1791_v41 = vld [vmem:[%s2614_s3 + $0x40] ss:$8 sps:$4 sm:$0xff]  }
 0x105   :  { %v1716_v48 = vpop.f32.mrb[20].mxu0  ;;  %v624_v49 = vpack.c.bf16 %v569_v44, %v568_v42  ;;  %v1793_v42 = vld [vmem:[%s2614_s3 + $0xa4] ss:$8 sps:$4 sm:$0xff]   ;;  %v1796_v44 = vld [vmem:[%s2614_s3 + $0xb4] ss:$8 sps:$4 sm:$0xff]  }
 0x106   :  { %v514_v51 = vadd.f32 %v1716_v48, %v2257_v1  ;;  %v505_v52 = vpop.f32.mrb[21].mxu0  ;;  %v1798_v48 = vld [vmem:[%s2614_s3 + $0xb0] ss:$8 sps:$4 sm:$0xff]  }
 0x107   :  { %v1717_v45 = vpop.f32.mrb[22].mxu0  ;;  %v506_v54 = vadd.f32 %v505_v52, %v2235_v55  ;;  %1580 = vmatprep.subr.bf16.mxu0 %v624_v49  ;;  %1726 = vmatprep.subr.bf16.mxu1 %v624_v49  ;;  %v1799_v49 = vld [vmem:[%s2614_s3 + $0xc4] ss:$8 sps:$4 sm:$0xff]   ;;  %v1802_v52 = vld [vmem:[%s2614_s3 + $0xd4] ss:$8 sps:$4 sm:$0xff]  }
 0x108   :  { %v517_v33 = vadd.f32 %v1717_v45, %v2259_v2  ;;  %v508_v46 = vpop.f32.mrb[23].mxu0  ;;  %1581 = vmatpush3.bf16.msra.mxu0 %v2277_v30  ;;  %1734 = vmatpush3.bf16.msra.mxu1 %v2277_v30  ;;  %v574_v37 = vmax.f32 %v514_v51, 0.0  ;;  %v1801_v51 = vld [vmem:[%s2614_s3 + $0xc0] ss:$8 sps:$4 sm:$0xff]   ;;  %v1804_v45 = vld [vmem:[%s2614_s3 + $0xd0] ss:$8 sps:$4 sm:$0xff]  }
 0x109   :  { %v509_v58 = vadd.f32 %v508_v46, %v2237_v56  ;;  %1582 = vmatprep.subr.bf16.mxu0 %v625_v43  ;;  %1727 = vmatprep.subr.bf16.mxu1 %v625_v43  ;;  %v572_v1 = vmax.f32 %v506_v54, 0.0  ;;  %v1795_v43 = vld [vmem:[%s2614_s3 + $0xa0] ss:$8 sps:$4 sm:$0xff]   ;;  %v1805_v54 = vld [vmem:[%s2614_s3 + $0xe4] ss:$8 sps:$4 sm:$0xff]  }
 0x10a   :  { %v575_v57 = vmax.f32 %v517_v33, 0.0  ;;  %v1807_v33 = vld [vmem:[%s2614_s3 + $0xe0] ss:$8 sps:$4 sm:$0xff]   ;;  %v1808_v46 = vld [vmem:[%s2614_s3 + $0xf4] ss:$8 sps:$4 sm:$0xff]  }
 0x10b   :  { %v573_v61 = vmax.f32 %v509_v58, 0.0  ;;  %v672_v58 = vpop.permute.xlu1 %671 }
 0x10c   :  { %v627_v60 = vpack.c.bf16 %v575_v57, %v574_v37  ;;  %1583 = vmatpush3.bf16.msra.mxu0 %v2273_v26  ;;  %1735 = vmatpush3.bf16.msra.mxu1 %v2273_v26  ;;  %v1810_v37 = vld [vmem:[%s2614_s3 + $0xf0] ss:$8 sps:$4 sm:$0xff]   ;;  %v667_v57 = vpop.permute.xlu0 %666 }
 0x10d   :  { %v1720_v55 = vpop.f32.mrb[24].mxu0  ;;  %v626_v2 = vpack.c.bf16 %v573_v61, %v572_v1 }
 0x10e   :  { %v530_v62 = vadd.f32 %v1720_v55, %v2265_v10  ;;  %v521_v63 = vpop.f32.mrb[25].mxu0 }
 0x10f   :  { %v1721_v0 = vpop.f32.mrb[26].mxu0  ;;  %v522_v30 = vadd.f32 %v521_v63, %v2261_v6  ;;  %1584 = vmatprep.subr.bf16.mxu0 %v626_v2  ;;  %1728 = vmatprep.subr.bf16.mxu1 %v626_v2 }
 0x110   :  { %v533_v4 = vadd.f32 %v1721_v0, %v2267_v11  ;;  %v524_v56 = vpop.f32.mrb[27].mxu0  ;;  %1585 = vmatpush3.bf16.msra.mxu0 %v2281_v50  ;;  %1736 = vmatpush3.bf16.msra.mxu1 %v2281_v50  ;;  %v578_v5 = vmax.f32 %v530_v62, 0.0  ;;  %v2417_v1 = vpop.permute.xlu0 %676 }
 0x111   :  { %v525_v26 = vadd.f32 %v524_v56, %v2263_v7  ;;  %1586 = vmatprep.subr.bf16.mxu0 %v627_v60  ;;  %1729 = vmatprep.subr.bf16.mxu1 %v627_v60  ;;  %v576_v10 = vmax.f32 %v522_v30, 0.0  ;;  %v2419_v60 = vpop.permute.xlu1 %681 }
 0x112   :  { %v579_v13 = vmax.f32 %v533_v4, 0.0 }
 0x113   :  { %v577_v15 = vmax.f32 %v525_v26, 0.0 }
 0x114   :  { %v629_v12 = vpack.c.bf16 %v579_v13, %v578_v5  ;;  %1587 = vmatpush3.bf16.msra.mxu0 %v2279_v47  ;;  %1737 = vmatpush3.bf16.msra.mxu1 %v2279_v47  ;;  %v2421_v61 = vpop.permute.xlu0 %686 }
 0x115   :  { %v1724_v6 = vpop.f32.mrb[28].mxu0  ;;  %v628_v11 = vpack.c.bf16 %v577_v15, %v576_v10  ;;  %v2423_v55 = vpop.permute.xlu1 %691 }
 0x116   :  { %v546_v17 = vadd.f32 %v1724_v6, %v2283_v53  ;;  %v537_v18 = vpop.f32.mrb[29].mxu0 }
 0x117   :  { %v1725_v8 = vpop.f32.mrb[30].mxu0  ;;  %v538_v50 = vadd.f32 %v537_v18, %v2271_v24  ;;  %1588 = vmatprep.subr.bf16.mxu0 %v628_v11  ;;  %1730 = vmatprep.subr.bf16.mxu1 %v628_v11 }
 0x118   :  { %v549_v16 = vadd.f32 %v1725_v8, %v2285_v59  ;;  %v540_v7 = vpop.f32.mrb[31].mxu0  ;;  %1589 = vmatpush3.bf16.msra.mxu0 %v2289_v14  ;;  %1738 = vmatpush3.bf16.msra.mxu1 %v2289_v14  ;;  %v582_v19 = vmax.f32 %v546_v17, 0.0  ;;  %v1766_v59 = vld [vmem:[%s2614_s3 + $0x50] ss:$8 sps:$4 sm:$0xff]   ;;  %v1771_v14 = vld [vmem:[%s2614_s3 + $0x64] ss:$8 sps:$4 sm:$0xff]   ;;  %v2425_v2 = vpop.permute.xlu0 %696 }
 0x119   :  { %v541_v47 = vadd.f32 %v540_v7, %v2275_v28  ;;  %1590 = vmatprep.subr.bf16.mxu0 %v629_v12  ;;  %1731 = vmatprep.subr.bf16.mxu1 %v629_v12  ;;  %v580_v53 = vmax.f32 %v538_v50, 0.0  ;;  %v1763_v28 = vld [vmem:[%s2614_s3] ss:$8 sps:$4 sm:$0xff]   ;;  %v2427_v62 = vpop.permute.xlu1 %701 }
 0x11a   :  { %v583_v20 = vmax.f32 %v549_v16, 0.0 }
 0x11b   :  { %v581_v22 = vmax.f32 %v541_v47, 0.0 }
 0x11c   :  { %v631_v21 = vpack.c.bf16 %v583_v20, %v582_v19  ;;  %1591 = vmatpush3.bf16.msra.mxu0 %v2287_v3  ;;  %1739 = vmatpush3.bf16.msra.mxu1 %v2287_v3  ;;  %v1769_v3 = vld [vmem:[%s2614_s3 + $0x14] ss:$8 sps:$4 sm:$0xff]   ;;  %v2429_v63 = vpop.permute.xlu0 %706 }
 0x11d   :  { %v630_v24 = vpack.c.bf16 %v581_v22, %v580_v53  ;;  %v2431_v0 = vpop.permute.xlu1 %711 }
 0x11f   :  { %1592 = vmatprep.subr.bf16.mxu0 %v630_v24  ;;  %1732 = vmatprep.subr.bf16.mxu1 %v630_v24 }
 0x120   :  { %1593 = vmatpush3.bf16.msra.mxu0 %v2293_v29  ;;  %1740 = vmatpush3.bf16.msra.mxu1 %v2293_v29  ;;  %v1779_v29 = vld [vmem:[%s2614_s3 + $0x20] ss:$8 sps:$4 sm:$0xff]   ;;  %v2433_v30 = vpop.permute.xlu0 %716 }
 0x121   :  { %1594 = vmatprep.subr.bf16.mxu0 %v631_v21  ;;  %1733 = vmatprep.subr.bf16.mxu1 %v631_v21  ;;  %v2435_v4 = vpop.permute.xlu1 %721 }
 0x124   :  { %1595 = vmatpush3.bf16.msra.mxu0 %v2291_v9  ;;  %1741 = vmatpush3.bf16.msra.mxu1 %v2291_v9  ;;  %v1774_v9 = vld [vmem:[%s2614_s3 + $0x60] ss:$8 sps:$4 sm:$0xff]   ;;  %v2437_v56 = vpop.permute.xlu0 %726  ;;  %s1836_s3 = smov [#allocation3]  }
 0x125   :  { %v2439_v5 = vpop.permute.xlu1 %731  ;;  %s1490_s21 = sshll.u32 %s1836_s3, 4  ;;  %s1491_s21 = int_to_ptr.vmem [resolvable:$true] %s1490_s21 }
 0x126   :  { %s1811_s22 = scalar_lea.vmem %s1491_s21, 16  ;;  %s1815_s23 = scalar_lea.vmem %s1491_s21, 32 }
 0x127   :  { %1017 = vmatmul.mubr.bf16.vlgmr.msra.gmra.mrb[32].mxu0 %v1763_v28  ;;  %1057 = vmatmul.mubr.bf16.vlgmr.msra.gmra.mrb[0].mxu1 %v1766_v59  ;;  %p1812_p0 = scmp.ne.s32.totalorder %s1491_s21, %s1811_s22  ;;  %p1816_p1 = scmp.lt.s32.totalorder %s1491_s21, %s1491_s21 }
 0x128   :  { %1024 = vmatprep.mubr.bf16.mxu0 %v1769_v3  ;;  %1064 = vmatprep.mubr.bf16.mxu1 %v1771_v14  ;;  %v2441_v13 = vpop.permute.xlu0 %736  ;;  %p1817_p2 = scmp.lt.s32.totalorder %s1815_s23, %s1811_s22 }
 0x129   :  { %v2443_v26 = vpop.permute.xlu1 %741 }
 0x12a   :  { %p1818_p3 = por %p1817_p2, %p1816_p1 }
 0x12c   :  { %v2445_v10 = vpop.permute.xlu0 %746  ;;  %p1819_p4 = pnand %p1818_p3, %p1812_p0 }
 0x12d   :  { %v2447_v12 = vpop.permute.xlu1 %751 }
 0x12f   :  { %1025 = vmatmul.mubr.bf16.gmra.mrb[36].mxu0 %v1773_v23  ;;  %1065 = vmatmul.mubr.bf16.gmra.mrb[4].mxu1 %v1774_v9 }
 0x130   :  { %1032 = vmatprep.mubr.bf16.mxu0 %v1775_v25  ;;  %1072 = vmatprep.mubr.bf16.mxu1 %v1777_v27  ;;  %v2449_v15 = vpop.permute.xlu0 %756 }
 0x131   :  { %v2451_v6 = vpop.permute.xlu1 %761 }
 0x134   :  { %v2453_v11 = vpop.permute.xlu0 %766 }
 0x135   :  { %v2455_v17 = vpop.permute.xlu1 %771 }
 0x137   :  { %1033 = vmatmul.mubr.bf16.gmra.mrb[40].mxu0 %v1779_v29  ;;  %1073 = vmatmul.mubr.bf16.gmra.mrb[8].mxu1 %v1780_v31 }
 0x138   :  { %1040 = vmatprep.mubr.bf16.mxu0 %v1781_v32  ;;  %1080 = vmatprep.mubr.bf16.mxu1 %v1783_v34  ;;  %v2457_v18 = vpop.permute.xlu0 %776 }
 0x139   :  { %v2459_v8 = vpop.permute.xlu1 %781 }
 0x13c   :  { %v2461_v50 = vpop.permute.xlu0 %786 }
 0x13d   :  { %v2463_v16 = vpop.permute.xlu1 %791 }
 0x13f   :  { %1041 = vmatmul.mubr.bf16.gmra.mrb[44].mxu0 %v1785_v35  ;;  %1081 = vmatmul.mubr.bf16.gmra.mrb[12].mxu1 %v1786_v36 }
 0x140   :  { %1048 = vmatprep.mubr.bf16.mxu0 %v1787_v38  ;;  %1088 = vmatprep.mubr.bf16.mxu1 %v1789_v39  ;;  %v2465_v7 = vpop.permute.xlu0 %796 }
 0x141   :  { %v2467_v19 = vpop.permute.xlu1 %801 }
 0x144   :  { %v2469_v20 = vpop.permute.xlu0 %806 }
 0x145   :  { %v1212_v47 = vpop.permute.xlu1 %1211 }
 0x147   :  { %1049 = vmatmul.mubr.bf16.gmra.mrb[48].mxu0 %v1791_v41  ;;  %1089 = vmatmul.mubr.bf16.gmra.mrb[16].mxu1 %v1792_v40 }
 0x148   :  { %1096 = vmatprep.mubr.bf16.mxu1 %v1793_v42  ;;  %v1217_v53 = vpop.permute.xlu0 %1216 }
 0x149   :  { %v1222_v21 = vpop.permute.xlu1 %1221 }
 0x14c   :  { %v1227_v22 = vpop.permute.xlu0 %1226 }
 0x14d   :  { %v2471_v24 = vpop.permute.xlu1 %1231 }
 0x14f   :  { %1097 = vmatmul.mubr.bf16.gmra.mrb[20].mxu1 %v1795_v43 }
 0x150   :  { %1104 = vmatprep.mubr.bf16.mxu1 %v1796_v44  ;;  %v2473_v28 = vpop.permute.xlu0 %1236 }
 0x151   :  { %v2475_v59 = vpop.permute.xlu1 %1241 }
 0x154   :  { %v2477_v3 = vpop.permute.xlu0 %1246 }
 0x155   :  { %v2479_v14 = vpop.permute.xlu1 %1251 }
 0x157   :  { %1105 = vmatmul.mubr.bf16.gmra.mrb[24].mxu1 %v1798_v48 }
 0x158   :  { %1112 = vmatprep.mubr.bf16.mxu1 %v1799_v49  ;;  %v2485_v43 = vpop.permute.xlu0 %1256 }
 0x159   :  { %v2487_v44 = vpop.permute.xlu1 %1261 }
 0x15f   :  { %1113 = vmatmul.mubr.bf16.gmra.mrb[28].mxu1 %v1801_v51 }
 0x160   :  { %1120 = vmatprep.mubr.bf16.mxu1 %v1802_v52 }
 0x167   :  { %1121 = vmatmul.mubr.bf16.gmra.mrb[32].mxu1 %v1804_v45 }
 0x168   :  { %1128 = vmatprep.mubr.bf16.mxu1 %v1805_v54 }
 0x16f   :  { %1129 = vmatmul.mubr.bf16.gmra.mrb[36].mxu1 %v1807_v33 }
 0x170   :  { %1136 = vmatprep.mubr.bf16.mxu1 %v1808_v46 }
 0x177   :  { %1137 = vmatmul.mubr.bf16.gmra.mrb[40].mxu1 %v1810_v37 }
 0x1fa   :  { %v1596_v23 = vpop.f32.mrb[32].mxu0  ;;  %v1626_v9 = vpop.f32.mrb[0].mxu1 }
 0x1fb   :  { %v1597_v25 = vpop.f32.mrb[33].mxu0  ;;  %v1627_v27 = vpop.f32.mrb[1].mxu1 }
 0x1fc   :  { %v1598_v29 = vadd.f32 %v1597_v25, %v1596_v23  ;;  %v2481_v31 = vadd.f32 %v1627_v27, %v1626_v9  ;;  %v1599_v32 = vpop.f32.mrb[34].mxu0  ;;  %v1629_v34 = vpop.f32.mrb[2].mxu1 }
 0x1fd   :  { %v1600_v35 = vpop.f32.mrb[35].mxu0  ;;  %v1630_v36 = vpop.f32.mrb[3].mxu1 }
 0x1fe   :  { %v1019_v38 = vadd.f32 %v1598_v29, %v667_v57  ;;  %v1601_v39 = vadd.f32 %v1600_v35, %v1599_v32  ;;  %v2483_v41 = vadd.f32 %v1630_v36, %v1629_v34  ;;  %v2499_v36 = vpop.permute.xlu1 %1271 }
 0x200   :  { %v1145_v40 = vmax.f32 %v1019_v38, 0.0  ;;  %v1022_v42 = vadd.f32 %v1601_v39, %v672_v58 }
 0x202   :  { %v1369_v48 = vmul.f32 %v1212_v47, %v1145_v40  ;;  %v1146_v49 = vmax.f32 %v1022_v42, 0.0  ;;  %v1602_v51 = vpop.f32.mrb[36].mxu0  ;;  %v1632_v52 = vpop.f32.mrb[4].mxu1 }
 0x203   :  { %v1603_v45 = vpop.f32.mrb[37].mxu0  ;;  %v1633_v54 = vpop.f32.mrb[5].mxu1 }
 0x204   :  { %v1370_v33 = vmul.f32 %v1217_v53, %v1146_v49  ;;  %v1605_v46 = vpop.f32.mrb[38].mxu0  ;;  %v1635_v37 = vpop.f32.mrb[6].mxu1  ;;  %v1604_v57 = vadd.f32 %v1603_v45, %v1602_v51  ;;  %v2489_v23 = vadd.f32 %v1633_v54, %v1632_v52  ;;  %v1402_v58 = vsel %vm1401_vm1, %v1369_v48, 0.0 }
 0x205   :  { %v1606_v9 = vpop.f32.mrb[39].mxu0  ;;  %v1636_v25 = vpop.f32.mrb[7].mxu1 }
 0x206   :  { %v1403_v27 = vsel %vm1401_vm1, %v1370_v33, 0.0  ;;  %v1607_v29 = vadd.f32 %v1606_v9, %v1605_v46  ;;  %v2493_v47 = vadd.f32 %v1636_v25, %v1635_v37  ;;  %v1027_v34 = vadd.f32 %v1604_v57, %v2417_v1  ;;  %v2497_v53 = vpop.permute.xlu0 %1266 }
 0x207   :  { %v1404_v32 = vadd.f32 %v1403_v27, %v1402_v58 }
 0x208   :  { %v1030_v35 = vadd.f32 %v1607_v29, %v2419_v60  ;;  %v1147_v38 = vmax.f32 %v1027_v34, 0.0  ;;  %v2510_v34 = vpop.permute.xlu1 %1281 }
 0x20a   :  { %v1148_v39 = vmax.f32 %v1030_v35, 0.0  ;;  %v1608_v40 = vpop.f32.mrb[40].mxu0  ;;  %v1638_v42 = vpop.f32.mrb[8].mxu1  ;;  %v1371_v49 = vmul.f32 %v1222_v21, %v1147_v38 }
 0x20b   :  { %v1609_v48 = vpop.f32.mrb[41].mxu0  ;;  %v1639_v51 = vpop.f32.mrb[9].mxu1 }
 0x20c   :  { %v1372_v52 = vmul.f32 %v1227_v22, %v1148_v39  ;;  %v1610_v45 = vadd.f32 %v1609_v48, %v1608_v40  ;;  %v2501_v54 = vadd.f32 %v1639_v51, %v1638_v42  ;;  %v1611_v33 = vpop.f32.mrb[42].mxu0  ;;  %v1641_v46 = vpop.f32.mrb[10].mxu1  ;;  %v1405_v1 = vsel %vm1401_vm1, %v1371_v49, 0.0 }
 0x20d   :  { %v1612_v60 = vpop.f32.mrb[43].mxu0  ;;  %v1642_v37 = vpop.f32.mrb[11].mxu1  ;;  %v1406_v57 = vadd.f32 %v1405_v1, %v1404_v32 }
 0x20e   :  { %v1407_v9 = vsel %vm1401_vm1, %v1372_v52, 0.0  ;;  %v1035_v25 = vadd.f32 %v1610_v45, %v2421_v61  ;;  %v1613_v58 = vadd.f32 %v1612_v60, %v1611_v33  ;;  %v2506_v27 = vadd.f32 %v1642_v37, %v1641_v46  ;;  %v2508_v22 = vpop.permute.xlu0 %1276 }
 0x20f   :  { %v1408_v21 = vadd.f32 %v1407_v9, %v1406_v57 }
 0x210   :  { %v1149_v29 = vmax.f32 %v1035_v25, 0.0  ;;  %v1038_v35 = vadd.f32 %v1613_v58, %v2423_v55 }
 0x212   :  { %v1373_v38 = vmul.f32 %v2471_v24, %v1149_v29  ;;  %v1614_v39 = vpop.f32.mrb[44].mxu0  ;;  %v1644_v40 = vpop.f32.mrb[12].mxu1  ;;  %v1150_v32 = vmax.f32 %v1038_v35, 0.0 }
 0x213   :  { %v1615_v42 = vpop.f32.mrb[45].mxu0  ;;  %v1645_v49 = vpop.f32.mrb[13].mxu1 }
 0x214   :  { %v1409_v61 = vsel %vm1401_vm1, %v1373_v38, 0.0  ;;  %v1616_v48 = vadd.f32 %v1615_v42, %v1614_v39  ;;  %v2515_v51 = vadd.f32 %v1645_v49, %v1644_v40  ;;  %v1617_v52 = vpop.f32.mrb[46].mxu0  ;;  %v1647_v45 = vpop.f32.mrb[14].mxu1  ;;  %v1374_v46 = vmul.f32 %v2473_v28, %v1150_v32 }
 0x215   :  { %v1410_v33 = vadd.f32 %v1409_v61, %v1408_v21  ;;  %v1618_v1 = vpop.f32.mrb[47].mxu0  ;;  %v1648_v60 = vpop.f32.mrb[15].mxu1 }
 0x216   :  { %v1043_v55 = vadd.f32 %v1616_v48, %v2425_v2  ;;  %v1619_v24 = vadd.f32 %v1618_v1, %v1617_v52  ;;  %v2519_v37 = vadd.f32 %v1648_v60, %v1647_v45  ;;  %v1411_v57 = vsel %vm1401_vm1, %v1374_v46, 0.0  ;;  %v2523_v29 = vpop.permute.xlu0 %1286  ;;  %v2525_v35 = vpop.permute.xlu1 %1291 }
 0x217   :  { %v1412_v9 = vadd.f32 %v1411_v57, %v1410_v33  ;;  %v1059_v2 = vadd.f32 %v2481_v31, %v2433_v30  ;;  %v1062_v52 = vadd.f32 %v2483_v41, %v2435_v4 }
 0x218   :  { %v1151_v25 = vmax.f32 %v1043_v55, 0.0  ;;  %v1046_v58 = vadd.f32 %v1619_v24, %v2427_v62 }
 0x219   :  { %v1155_v55 = vmax.f32 %v1059_v2, 0.0 }
 0x21a   :  { %v1375_v21 = vmul.f32 %v2475_v59, %v1151_v25  ;;  %v1152_v28 = vmax.f32 %v1046_v58, 0.0  ;;  %v1620_v38 = vpop.f32.mrb[48].mxu0  ;;  %v1650_v39 = vpop.f32.mrb[16].mxu1  ;;  %v1156_v58 = vmax.f32 %v1062_v52, 0.0 }
 0x21b   :  { %v1621_v40 = vpop.f32.mrb[49].mxu0  ;;  %v1651_v32 = vpop.f32.mrb[17].mxu1 }
 0x21c   :  { %v1413_v42 = vsel %vm1401_vm1, %v1375_v21, 0.0  ;;  %v1376_v49 = vmul.f32 %v2477_v3, %v1152_v28  ;;  %v1622_v61 = vadd.f32 %v1621_v40, %v1620_v38  ;;  %v1623_v62 = vpop.f32.mrb[50].mxu0  ;;  %v1653_v48 = vpop.f32.mrb[18].mxu1  ;;  %v1652_v59 = vadd.f32 %v1651_v32, %v1650_v39 }
 0x21d   :  { %v1414_v45 = vadd.f32 %v1413_v42, %v1412_v9  ;;  %v1624_v33 = vpop.f32.mrb[51].mxu0  ;;  %v1654_v46 = vpop.f32.mrb[19].mxu1  ;;  %v1067_v3 = vadd.f32 %v2489_v23, %v2437_v56  ;;  %v1070_v9 = vadd.f32 %v2493_v47, %v2439_v5  ;;  %v1379_v38 = vmul.f32 %v2487_v44, %v1155_v55 }
 0x21e   :  { %v1415_v1 = vsel %vm1401_vm1, %v1376_v49, 0.0  ;;  %v1051_v30 = vadd.f32 %v1622_v61, %v2429_v63  ;;  %v1625_v31 = vadd.f32 %v1624_v33, %v1623_v62  ;;  %v1655_v60 = vadd.f32 %v1654_v46, %v1653_v48  ;;  %v2538_v57 = vpop.permute.xlu0 %1296  ;;  %v2541_v41 = vpop.permute.xlu1 %1301 }
 0x21f   :  { %v1416_v24 = vadd.f32 %v1415_v1, %v1414_v45  ;;  %v1157_v39 = vmax.f32 %v1067_v3, 0.0  ;;  %v1075_v23 = vadd.f32 %v2501_v54, %v2441_v13  ;;  %v1158_v42 = vmax.f32 %v1070_v9, 0.0 }
 0x220   :  { %v1153_v25 = vmax.f32 %v1051_v30, 0.0  ;;  %v1054_v4 = vadd.f32 %v1625_v31, %v2431_v0  ;;  %v1078_v44 = vadd.f32 %v2506_v27, %v2443_v26  ;;  %v1083_v13 = vadd.f32 %v2515_v51, %v2445_v10 }
 0x221   :  { %v1381_v52 = vmul.f32 %v2499_v36, %v1157_v39  ;;  %v1159_v45 = vmax.f32 %v1075_v23, 0.0  ;;  %v1382_v33 = vmul.f32 %v2508_v22, %v1158_v42  ;;  %v1086_v26 = vadd.f32 %v2519_v37, %v2447_v12 }
 0x222   :  { %v1377_v63 = vmul.f32 %v2479_v14, %v1153_v25  ;;  %v1154_v21 = vmax.f32 %v1054_v4, 0.0  ;;  %v1656_v28 = vpop.f32.mrb[20].mxu1  ;;  %v1307_v49 = vpop.permute.xlu0 %1306  ;;  %v1380_v14 = vmul.f32 %v2497_v53, %v1156_v58  ;;  %v1160_v1 = vmax.f32 %v1078_v44, 0.0 }
 0x223   :  { %v1657_v56 = vpop.f32.mrb[21].mxu1  ;;  %v1312_v48 = vpop.permute.xlu1 %1311  ;;  %v1161_v30 = vmax.f32 %v1083_v13, 0.0  ;;  %v1425_v51 = vsel %vm1401_vm1, %v1381_v52, 0.0  ;;  %v1383_v3 = vmul.f32 %v2510_v34, %v1159_v45  ;;  %v1091_v36 = vadd.f32 %v1652_v59, %v2449_v15 }
 0x224   :  { %v1417_v2 = vsel %vm1401_vm1, %v1377_v63, 0.0  ;;  %v1378_v0 = vmul.f32 %v2485_v43, %v1154_v21  ;;  %v1658_v40 = vadd.f32 %v1657_v56, %v1656_v28  ;;  %v1659_v32 = vpop.f32.mrb[22].mxu1  ;;  %v1421_v43 = vsel %vm1401_vm1, %v1379_v38, 0.0 }
 0x225   :  { %v1418_v5 = vadd.f32 %v1417_v2, %v1416_v24  ;;  %v1660_v47 = vpop.f32.mrb[23].mxu1  ;;  %v1423_v53 = vsel %vm1401_vm1, %v1380_v14, 0.0  ;;  %v1427_v4 = vsel %vm1401_vm1, %v1382_v33, 0.0  ;;  %v1384_v12 = vmul.f32 %v2523_v29, %v1160_v1 }
 0x226   :  { %v1419_v61 = vsel %vm1401_vm1, %v1378_v0, 0.0  ;;  %v1661_v62 = vadd.f32 %v1660_v47, %v1659_v32  ;;  %v1317_v10 = vpop.permute.xlu0 %1316  ;;  %v1162_v37 = vmax.f32 %v1086_v26, 0.0  ;;  %v1094_v63 = vadd.f32 %v1655_v60, %v2451_v6 }
 0x227   :  { %v1420_v54 = vadd.f32 %v1419_v61, %v1418_v5  ;;  %v1322_v25 = vpop.permute.xlu1 %1321  ;;  %v1385_v28 = vmul.f32 %v2525_v35, %v1161_v30  ;;  %v1429_v34 = vsel %vm1401_vm1, %v1383_v3, 0.0  ;;  %v1163_v39 = vmax.f32 %v1091_v36, 0.0 }
 0x228   :  { %v1099_v15 = vadd.f32 %v1658_v40, %v2453_v11  ;;  %v1102_v56 = vadd.f32 %v1661_v62, %v2455_v17  ;;  %v1431_v2 = vsel %vm1401_vm1, %v1384_v12, 0.0  ;;  %v1386_v29 = vmul.f32 %v2538_v57, %v1162_v37 }
 0x229   :  { %v1422_v46 = vadd.f32 %v1421_v43, %v1420_v54  ;;  %v1164_v0 = vmax.f32 %v1094_v63, 0.0  ;;  %v1433_v60 = vsel %vm1401_vm1, %v1385_v28, 0.0  ;;  %v1387_v5 = vmul.f32 %v2541_v41, %v1163_v39 }
 0x22a   :  { %v1662_v27 = vpop.f32.mrb[24].mxu1  ;;  %v1327_v23 = vpop.permute.xlu0 %1326  ;;  %v1165_v47 = vmax.f32 %v1099_v15, 0.0  ;;  %v1166_v44 = vmax.f32 %v1102_v56, 0.0  ;;  %v1435_v62 = vsel %vm1401_vm1, %v1386_v29, 0.0 }
 0x22b   :  { %v1424_v31 = vadd.f32 %v1423_v53, %v1422_v46  ;;  %v1663_v55 = vpop.f32.mrb[25].mxu1  ;;  %v1332_v6 = vpop.permute.xlu1 %1331  ;;  %v1388_v57 = vmul.f32 %v1307_v49, %v1164_v0  ;;  %v1437_v45 = vsel %vm1401_vm1, %v1387_v5, 0.0 }
 0x22c   :  { %v1664_v24 = vadd.f32 %v1663_v55, %v1662_v27  ;;  %v1665_v22 = vpop.f32.mrb[26].mxu1  ;;  %v1389_v33 = vmul.f32 %v1312_v48, %v1165_v47  ;;  %v1390_v1 = vmul.f32 %v1317_v10, %v1166_v44 }
 0x22d   :  { %v1426_v9 = vadd.f32 %v1425_v51, %v1424_v31  ;;  %v1666_v58 = vpop.f32.mrb[27].mxu1  ;;  %v1439_v26 = vsel %vm1401_vm1, %v1388_v57, 0.0 }
 0x22e   :  { %v1667_v21 = vadd.f32 %v1666_v58, %v1665_v22  ;;  %v1107_v11 = vadd.f32 %v1664_v24, %v2457_v18  ;;  %v1337_v52 = vpop.permute.xlu0 %1336  ;;  %v1441_v55 = vsel %vm1401_vm1, %v1389_v33, 0.0 }
 0x22f   :  { %v1428_v38 = vadd.f32 %v1427_v4, %v1426_v9  ;;  %v1342_v18 = vpop.permute.xlu1 %1341 }
 0x230   :  { %v1110_v13 = vadd.f32 %v1667_v21, %v2459_v8  ;;  %v1167_v41 = vmax.f32 %v1107_v11, 0.0 }
 0x231   :  { %v1430_v59 = vadd.f32 %v1429_v34, %v1428_v38 }
 0x232   :  { %v1668_v32 = vpop.f32.mrb[28].mxu1  ;;  %v1168_v27 = vmax.f32 %v1110_v13, 0.0  ;;  %v1391_v51 = vmul.f32 %v1322_v25, %v1167_v41  ;;  %v812_v4 = vpop.permute.xlu0 %811 }
 0x233   :  { %v1432_v35 = vadd.f32 %v1431_v2, %v1430_v59  ;;  %v1669_v42 = vpop.f32.mrb[29].mxu1 }
 0x234   :  { %v1670_v40 = vadd.f32 %v1669_v42, %v1668_v32  ;;  %v1671_v14 = vpop.f32.mrb[30].mxu1  ;;  %v1392_v10 = vmul.f32 %v1327_v23, %v1168_v27  ;;  %v1445_v63 = vsel %vm1401_vm1, %v1391_v51, 0.0 }
 0x235   :  { %v1434_v17 = vadd.f32 %v1433_v60, %v1432_v35  ;;  %v1672_v61 = vpop.f32.mrb[31].mxu1 }
 0x236   :  { %v1673_v54 = vadd.f32 %v1672_v61, %v1671_v14  ;;  %v1115_v46 = vadd.f32 %v1670_v40, %v2461_v50  ;;  %v1443_v50 = vsel %vm1401_vm1, %v1390_v1, 0.0  ;;  %v1447_v34 = vsel %vm1401_vm1, %v1392_v10, 0.0  ;;  %v817_v2 = vpop.permute.xlu0 %816 }
 0x237   :  { %v1436_v43 = vadd.f32 %v1435_v62, %v1434_v17 }
 0x238   :  { %v1118_v30 = vadd.f32 %v1673_v54, %v2463_v16  ;;  %v1169_v3 = vmax.f32 %v1115_v46, 0.0  ;;  %v1347_v16 = vpop.permute.xlu1 %1346 }
 0x239   :  { %v1438_v53 = vadd.f32 %v1437_v45, %v1436_v43 }
 0x23a   :  { %v1674_v49 = vpop.f32.mrb[32].mxu1  ;;  %v1170_v9 = vmax.f32 %v1118_v30, 0.0  ;;  %v1393_v21 = vmul.f32 %v1332_v6, %v1169_v3  ;;  %v822_v61 = vpop.permute.xlu0 %821 }
 0x23b   :  { %v1440_v31 = vadd.f32 %v1439_v26, %v1438_v53  ;;  %v1675_v8 = vpop.f32.mrb[33].mxu1 }
 0x23c   :  { %v1676_v36 = vadd.f32 %v1675_v8, %v1674_v49  ;;  %v1677_v48 = vpop.f32.mrb[34].mxu1  ;;  %v1394_v39 = vmul.f32 %v1337_v52, %v1170_v9  ;;  %v1352_v60 = vpop.permute.xlu1 %1351 }
 0x23d   :  { %v1442_v24 = vadd.f32 %v1441_v55, %v1440_v31  ;;  %v1678_v22 = vpop.f32.mrb[35].mxu1 }
 0x23e   :  { %v1123_v58 = vadd.f32 %v1676_v36, %v2465_v7  ;;  %v1679_v12 = vadd.f32 %v1678_v22, %v1677_v48  ;;  %v1449_v7 = vsel %vm1401_vm1, %v1393_v21, 0.0  ;;  %v1451_v42 = vsel %vm1401_vm1, %v1394_v39, 0.0  ;;  %v1362_v8 = vpop.permute.xlu0 %1361 }
 0x23f   :  { %v1444_v37 = vadd.f32 %v1443_v50, %v1442_v24  ;;  %v1477_v22 = vlaneseq }
 0x240   :  { %v1171_v28 = vmax.f32 %v1123_v58, 0.0  ;;  %v1126_v25 = vadd.f32 %v1679_v12, %v2467_v19  ;;  %v1357_v43 = vpop.permute.xlu1 %1356 }
 0x241   :  { %v1446_v38 = vadd.f32 %v1445_v63, %v1444_v37  ;;  %v1478_v9 = vshrl.u32 %v1477_v22, 7 }
 0x242   :  { %v1172_v15 = vmax.f32 %v1126_v25, 0.0  ;;  %v1680_v59 = vpop.f32.mrb[36].mxu1  ;;  %v1395_v29 = vmul.f32 %v1342_v18, %v1171_v28  ;;  %v1475_v63 = vpop.permute.xlu0 %1474 }
 0x243   :  { %v1448_v56 = vadd.f32 %v1447_v34, %v1446_v38  ;;  %v1681_v23 = vpop.f32.mrb[37].mxu1 }
 0x244   :  { %v1682_v0 = vadd.f32 %v1681_v23, %v1680_v59  ;;  %v1683_v32 = vpop.f32.mrb[38].mxu1  ;;  %v1396_v19 = vmul.f32 %v1347_v16, %v1172_v15  ;;  %v1453_v40 = vsel %vm1401_vm1, %v1395_v29, 0.0  ;;  %v1367_v3 = vpop.permute.xlu1 %1366  ;;  %v1479_v16 = vsub.s32 0, %v1478_v9 }
 0x245   :  { %v1450_v35 = vadd.f32 %v1449_v7, %v1448_v56  ;;  %v1684_v6 = vpop.f32.mrb[39].mxu1 }
 0x246   :  { %v1131_v5 = vadd.f32 %v1682_v0, %v2469_v20  ;;  %v1685_v47 = vadd.f32 %v1684_v6, %v1683_v32  ;;  %v1455_v62 = vsel %vm1401_vm1, %v1396_v19, 0.0  ;;  %v1480_v28 = vrot.slane %v1475_v63, %v1479_v16 }
 0x247   :  { %v1452_v11 = vadd.f32 %v1451_v42, %v1450_v35 }
 0x248   :  { %v1173_v14 = vmax.f32 %v1131_v5, 0.0  ;;  %v1134_v17 = vadd.f32 %v1685_v47, %v812_v4 }
 0x249   :  { %v1454_v44 = vadd.f32 %v1453_v40, %v1452_v11 }
 0x24a   :  { %v1397_v57 = vmul.f32 %v1352_v60, %v1173_v14  ;;  %v1174_v13 = vmax.f32 %v1134_v17, 0.0  ;;  %v1686_v54 = vpop.f32.mrb[40].mxu1 }
 0x24b   :  { %v1456_v52 = vadd.f32 %v1455_v62, %v1454_v44  ;;  %v1687_v45 = vpop.f32.mrb[41].mxu1 }
 0x24c   :  { %v1457_v33 = vsel %vm1401_vm1, %v1397_v57, 0.0  ;;  %v1398_v41 = vmul.f32 %v1357_v43, %v1174_v13  ;;  %v1688_v20 = vadd.f32 %v1687_v45, %v1686_v54  ;;  %v1689_v46 = vpop.f32.mrb[42].mxu1 }
 0x24d   :  { %v1458_v18 = vadd.f32 %v1457_v33, %v1456_v52  ;;  %v1690_v53 = vpop.f32.mrb[43].mxu1 }
 0x24e   :  { %v1459_v1 = vsel %vm1401_vm1, %v1398_v41, 0.0  ;;  %v1139_v26 = vadd.f32 %v1688_v20, %v817_v2  ;;  %v1691_v27 = vadd.f32 %v1690_v53, %v1689_v46 }
 0x24f   :  { %v1460_v30 = vadd.f32 %v1459_v1, %v1458_v18 }
 0x250   :  { %v1175_v49 = vmax.f32 %v1139_v26, 0.0  ;;  %v1142_v31 = vadd.f32 %v1691_v27, %v822_v61 }
 0x252   :  { %v1399_v55 = vmul.f32 %v1362_v8, %v1175_v49  ;;  %v1176_v51 = vmax.f32 %v1142_v31, 0.0 }
 0x254   :  { %v1461_v36 = vsel %vm1401_vm1, %v1399_v55, 0.0  ;;  %v1400_v48 = vmul.f32 %v1367_v3, %v1176_v51 }
 0x255   :  { %v1462_v24 = vadd.f32 %v1461_v36, %v1460_v30 }
 0x256   :  { %v1463_v50 = vsel %vm1401_vm1, %v1400_v48, 0.0 }
 0x257   :  { %v1464_v4 = vadd.f32 %v1463_v50, %v1462_v24 }
 0x259   :  { %v1465_v10 = vrot.slane %v1464_v4, 4 }
 0x25b   :  { %v1466_v58 = vadd.f32 %v1465_v10, %v1464_v4 }
 0x25d   :  { %v1467_v12 = vrot.slane %v1466_v58, 2 }
 0x25f   :  { %v1468_v37 = vadd.f32 %v1467_v12, %v1466_v58 }
 0x261   :  { %v1469_v21 = vrot.slane %v1468_v37, 1 }
 0x263   :  { %v1470_v25 = vadd.f32 %v1469_v21, %v1468_v37 }
 0x265   :  { %v1481_v38 = vadd.f32 %v1480_v28, %v1470_v25 }
 0x267   :  { %1483 = vst.msk [vmem:[#allocation3] sm:$0x1] %vm1482_vm2, %v1481_v38 }
 0x268   :  { %1822 = shalt.err (!%p1819_p4)
}
 0x269   :  { %s1823_s26 = scalar_lea.hbm %s2618_s7, 16 }
 0x26a   :  { %p1824_p5 = scmp.ne.s32.totalorder %s2618_s7, %s1823_s26  ;;  %p1827_p6 = scmp.lt.u32.totalorder %s1823_s26, %s2618_s7 }
 0x26c   :  { %p1829_p7 = pnand %p1827_p6, %p1824_p5 }
 0x26e   :  { %1832 = shalt.err (!%p1829_p7)
}
 0x26f   :  { %1493 = dma.vmem_to_hbm [thread:$0]  %s1491_s21, 16, %s2618_s7, [#allocation4]  }
 0x270   :  { %1833 = dma.done.wait [#allocation4], 16  }
 0x271   :  { %1834 = vsyncadd [#allocation4], 4294967280 }
 0x272   :  { %1497 = vsyncpa [#allocation4], 1 }

// kernel: tpu_custom_call.1
= control target key start
LH: loop header
LB: loop body
LE: loop exit
PB: predicated region body
PF: predicated region fallthrough
CT: control target
= control target key end

     0   :  { %s2611_s0 = inlined_call_operand.vmem [shape: bf16[16,32], index: 0, kind: input, shape index: {}]   ;;  %s2612_s1 = inlined_call_operand.vmem [shape: bf16[256,16], index: 1, kind: input, shape index: {}]   ;;  %s2613_s2 = inlined_call_operand.vmem [shape: f32[256,1], index: 2, kind: input, shape index: {}]   ;;  %s2614_s3 = inlined_call_operand.vmem [shape: bf16[256,256], index: 3, kind: input, shape index: {}]   ;;  %s2615_s4 = inlined_call_operand.vmem [shape: f32[256,1], index: 4, kind: input, shape index: {}]   ;;  %s2616_s5 = inlined_call_operand.vmem [shape: f32[256,1], index: 5, kind: input, shape index: {}]   ;;  %s2617_s6 = inlined_call_operand.<no memory space> [shape: f32[1,1], index: 6, kind: input, shape index: {}]   ;;  %s2618_s7 = inlined_call_operand.hbm [shape: f32[1,1,32], index: 7, kind: output, shape index: {}]  }
   0x1   :  { %v12_v0 = vstv %s2617_s6 }
   0x2   :  { %13 = vst [vmem:[#allocation2] sm:$0x1] %v12_v0 }
   0x3   :  { %v80_v1 = vld [vmem:[%s2613_s2 + $0x80] sm:$0xff]  ;;  %v1835_v3 = vmov 0   ;;  %v81_v5 = vld [vmem:[%s2613_s2 + $0x88] sm:$0xff]  ;;  %vm342_vm0 = vcmask 130048   ;;  %v1749_v9 = vld [vmem:[%s2612_s1 + $0x10] sm:$0xff]  }
   0x4   :  { %v64_v2 = vld [vmem:[%s2613_s2] sm:$0xff]  ;;  %1745 = vset.pattern.permute.xlu1 %v1835_v3  ;;  %1744 = vset.pattern.permute.xlu0 %v1835_v3  ;;  %v65_v6 = vld [vmem:[%s2613_s2 + $0x8] sm:$0xff]  ;;  %v82_v10 = vld [vmem:[%s2613_s2 + $0x90] sm:$0xff] }
   0x5   :  { %v1746_v4 = vld [vmem:[%s2611_s0] sm:$0xff]   ;;  %178 = vperm.xlu0 %1744, %v80_v1   ;;  %98 = vperm.xlu1 %1745, %v64_v2   ;;  %v1748_v8 = vld [vmem:[%s2612_s1 + $0x8] sm:$0xff]   ;;  %v83_v11 = vld [vmem:[%s2613_s2 + $0x98] sm:$0xff] }
   0x6   :  { %1692 = vmatprep.subr.bf16.mxu0 %v1746_v4  ;;  %v1747_v7 = vld [vmem:[%s2612_s1] sm:$0xff]   ;;  %v66_v12 = vld [vmem:[%s2613_s2 + $0x10] sm:$0xff]  ;;  %v67_v13 = vld [vmem:[%s2613_s2 + $0x18] sm:$0xff] }
   0x7   :  { %1693 = vmatpush3.bf16.msra.mxu0 %v1746_v4  ;;  %1694 = vmatprep.mubr.msk.bf16.mxu0 %vm342_vm0, %v1747_v7  ;;  %v1750_v14 = vld [vmem:[%s2612_s1 + $0x18] sm:$0xff]   ;;  %v1751_v15 = vld [vmem:[%s2612_s1 + $0x20] sm:$0xff]   ;;  %v85_v17 = vld [vmem:[%s2613_s2 + $0xa8] sm:$0xff] }
   0x8   :  { %v84_v16 = vld [vmem:[%s2613_s2 + $0xa0] sm:$0xff]  ;;  %v69_v19 = vld [vmem:[%s2613_s2 + $0x28] sm:$0xff]  ;;  %v1753_v21 = vld [vmem:[%s2612_s1 + $0x30] sm:$0xff]  }
   0x9   :  { %183 = vperm.xlu0 %1744, %v81_v5   ;;  %103 = vperm.xlu1 %1745, %v65_v6   ;;  %v68_v18 = vld [vmem:[%s2613_s2 + $0x20] sm:$0xff]  ;;  %v1752_v20 = vld [vmem:[%s2612_s1 + $0x28] sm:$0xff]   ;;  %v86_v22 = vld [vmem:[%s2613_s2 + $0xb0] sm:$0xff] }
   0xa   :  { %1695 = vmatmul.mubr.msk.bf16.vlgmr.msra.gmra.mrb[0].mxu0 %vm342_vm0, %v1748_v8  ;;  %v87_v23 = vld [vmem:[%s2613_s2 + $0xb8] sm:$0xff]  ;;  %v70_v24 = vld [vmem:[%s2613_s2 + $0x30] sm:$0xff]  ;;  %v1755_v27 = vld [vmem:[%s2612_s1 + $0x40] sm:$0xff]  }
   0xb   :  { %1698 = vmatprep.mubr.msk.bf16.mxu0 %vm342_vm0, %v1749_v9  ;;  %v71_v25 = vld [vmem:[%s2613_s2 + $0x38] sm:$0xff]  ;;  %v88_v28 = vld [vmem:[%s2613_s2 + $0xc0] sm:$0xff]  ;;  %v89_v29 = vld [vmem:[%s2613_s2 + $0xc8] sm:$0xff] }
   0xc   :  { %v1754_v26 = vld [vmem:[%s2612_s1 + $0x38] sm:$0xff]   ;;  %v72_v30 = vld [vmem:[%s2613_s2 + $0x40] sm:$0xff]  ;;  %v73_v31 = vld [vmem:[%s2613_s2 + $0x48] sm:$0xff] }
   0xd   :  { %188 = vperm.xlu0 %1744, %v82_v10   ;;  %193 = vperm.xlu1 %1745, %v83_v11   ;;  %v1756_v32 = vld [vmem:[%s2612_s1 + $0x48] sm:$0xff]   ;;  %v1757_v33 = vld [vmem:[%s2612_s1 + $0x50] sm:$0xff]   ;;  %v91_v35 = vld [vmem:[%s2613_s2 + $0xd8] sm:$0xff] }
   0xe   :  { %v90_v34 = vld [vmem:[%s2613_s2 + $0xd0] sm:$0xff]  ;;  %v75_v37 = vld [vmem:[%s2613_s2 + $0x58] sm:$0xff]  ;;  %v1759_v39 = vld [vmem:[%s2612_s1 + $0x60] sm:$0xff]  }
   0xf   :  { %v74_v36 = vld [vmem:[%s2613_s2 + $0x50] sm:$0xff]  ;;  %v1758_v38 = vld [vmem:[%s2612_s1 + $0x58] sm:$0xff]   ;;  %v92_v40 = vld [vmem:[%s2613_s2 + $0xe0] sm:$0xff] }
  0x10   :  { %v93_v41 = vld [vmem:[%s2613_s2 + $0xe8] sm:$0xff]  ;;  %v76_v42 = vld [vmem:[%s2613_s2 + $0x60] sm:$0xff]  ;;  %v1761_v45 = vld [vmem:[%s2612_s1 + $0x70] sm:$0xff]  }
  0x11   :  { %108 = vperm.xlu0 %1744, %v66_v12   ;;  %113 = vperm.xlu1 %1745, %v67_v13   ;;  %v77_v43 = vld [vmem:[%s2613_s2 + $0x68] sm:$0xff]  ;;  %v94_v46 = vld [vmem:[%s2613_s2 + $0xf0] sm:$0xff]  ;;  %v95_v47 = vld [vmem:[%s2613_s2 + $0xf8] sm:$0xff] }
  0x12   :  { %1699 = vmatmul.mubr.msk.bf16.gmra.mrb[4].mxu0 %vm342_vm0, %v1750_v14  ;;  %v1760_v44 = vld [vmem:[%s2612_s1 + $0x68] sm:$0xff]   ;;  %v78_v48 = vld [vmem:[%s2613_s2 + $0x70] sm:$0xff]  ;;  %v79_v49 = vld [vmem:[%s2613_s2 + $0x78] sm:$0xff] }
  0x13   :  { %1702 = vmatprep.mubr.msk.bf16.mxu0 %vm342_vm0, %v1751_v15  ;;  %v1762_v50 = vld [vmem:[%s2612_s1 + $0x78] sm:$0xff]  }
  0x15   :  { %198 = vperm.xlu0 %1744, %v84_v16   ;;  %203 = vperm.xlu1 %1745, %v85_v17  }
  0x19   :  { %118 = vperm.xlu0 %1744, %v68_v18   ;;  %123 = vperm.xlu1 %1745, %v69_v19  }
  0x1a   :  { %1703 = vmatmul.mubr.msk.bf16.gmra.mrb[8].mxu0 %vm342_vm0, %v1752_v20 }
  0x1b   :  { %1706 = vmatprep.mubr.msk.bf16.mxu0 %vm342_vm0, %v1753_v21 }
  0x1d   :  { %208 = vperm.xlu0 %1744, %v86_v22   ;;  %213 = vperm.xlu1 %1745, %v87_v23  }
  0x21   :  { %128 = vperm.xlu0 %1744, %v70_v24   ;;  %133 = vperm.xlu1 %1745, %v71_v25  }
  0x22   :  { %1707 = vmatmul.mubr.msk.bf16.gmra.mrb[12].mxu0 %vm342_vm0, %v1754_v26 }
  0x23   :  { %1710 = vmatprep.mubr.msk.bf16.mxu0 %vm342_vm0, %v1755_v27 }
  0x25   :  { %218 = vperm.xlu0 %1744, %v88_v28   ;;  %223 = vperm.xlu1 %1745, %v89_v29  }
  0x29   :  { %138 = vperm.xlu0 %1744, %v72_v30   ;;  %143 = vperm.xlu1 %1745, %v73_v31  }
  0x2a   :  { %1711 = vmatmul.mubr.msk.bf16.gmra.mrb[16].mxu0 %vm342_vm0, %v1756_v32 }
  0x2b   :  { %1714 = vmatprep.mubr.msk.bf16.mxu0 %vm342_vm0, %v1757_v33 }
  0x2d   :  { %228 = vperm.xlu0 %1744, %v90_v34   ;;  %233 = vperm.xlu1 %1745, %v91_v35  }
  0x31   :  { %148 = vperm.xlu0 %1744, %v74_v36   ;;  %153 = vperm.xlu1 %1745, %v75_v37  }
  0x32   :  { %1715 = vmatmul.mubr.msk.bf16.gmra.mrb[20].mxu0 %vm342_vm0, %v1758_v38 }
  0x33   :  { %1718 = vmatprep.mubr.msk.bf16.mxu0 %vm342_vm0, %v1759_v39 }
  0x35   :  { %238 = vperm.xlu0 %1744, %v92_v40   ;;  %243 = vperm.xlu1 %1745, %v93_v41  }
  0x39   :  { %158 = vperm.xlu0 %1744, %v76_v42   ;;  %163 = vperm.xlu1 %1745, %v77_v43  }
  0x3a   :  { %1719 = vmatmul.mubr.msk.bf16.gmra.mrb[24].mxu0 %vm342_vm0, %v1760_v44 }
  0x3b   :  { %1722 = vmatprep.mubr.msk.bf16.mxu0 %vm342_vm0, %v1761_v45 }
  0x3d   :  { %248 = vperm.xlu0 %1744, %v94_v46   ;;  %253 = vperm.xlu1 %1745, %v95_v47  }
  0x3e   :  { %14 = vsyncpa [#allocation4], 0  ;;  %v632_v51 = vld [vmem:[%s2615_s4] sm:$0xff]  ;;  %v633_v52 = vld [vmem:[%s2615_s4 + $0x8] sm:$0xff]  ;;  %vm1401_vm1 = vcmask 261120   ;;  %vm1482_vm2 = vcmask 253952  }
  0x3f   :  { %v634_v53 = vld [vmem:[%s2615_s4 + $0x10] sm:$0xff]  ;;  %v635_v54 = vld [vmem:[%s2615_s4 + $0x18] sm:$0xff]  ;;  %v636_v55 = vld [vmem:[%s2615_s4 + $0x20] sm:$0xff] }
  0x40   :  { %v637_v56 = vld [vmem:[%s2615_s4 + $0x28] sm:$0xff]  ;;  %v638_v57 = vld [vmem:[%s2615_s4 + $0x30] sm:$0xff]  ;;  %v639_v58 = vld [vmem:[%s2615_s4 + $0x38] sm:$0xff] }
  0x41   :  { %168 = vperm.xlu0 %1744, %v78_v48   ;;  %173 = vperm.xlu1 %1745, %v79_v49   ;;  %v640_v59 = vld [vmem:[%s2615_s4 + $0x40] sm:$0xff]  ;;  %v641_v60 = vld [vmem:[%s2615_s4 + $0x48] sm:$0xff]  ;;  %v642_v61 = vld [vmem:[%s2615_s4 + $0x50] sm:$0xff] }
  0x42   :  { %1723 = vmatmul.mubr.msk.bf16.gmra.mrb[28].mxu0 %vm342_vm0, %v1762_v50  ;;  %v643_v62 = vld [vmem:[%s2615_s4 + $0x58] sm:$0xff]  ;;  %v644_v63 = vld [vmem:[%s2615_s4 + $0x60] sm:$0xff]  ;;  %v645_v0 = vld [vmem:[%s2615_s4 + $0x68] sm:$0xff] }
  0x43   :  { %v646_v1 = vld [vmem:[%s2615_s4 + $0x70] sm:$0xff]  ;;  %v647_v2 = vld [vmem:[%s2615_s4 + $0x78] sm:$0xff]  ;;  %v648_v3 = vld [vmem:[%s2615_s4 + $0x80] sm:$0xff] }
  0x44   :  { %v649_v4 = vld [vmem:[%s2615_s4 + $0x88] sm:$0xff]  ;;  %v650_v5 = vld [vmem:[%s2615_s4 + $0x90] sm:$0xff]  ;;  %v651_v6 = vld [vmem:[%s2615_s4 + $0x98] sm:$0xff] }
  0x45   :  { %666 = vperm.xlu0 %1744, %v632_v51   ;;  %671 = vperm.xlu1 %1745, %v633_v52   ;;  %v652_v7 = vld [vmem:[%s2615_s4 + $0xa0] sm:$0xff]  ;;  %v653_v8 = vld [vmem:[%s2615_s4 + $0xa8] sm:$0xff]  ;;  %v654_v9 = vld [vmem:[%s2615_s4 + $0xb0] sm:$0xff] }
  0x46   :  { %v655_v10 = vld [vmem:[%s2615_s4 + $0xb8] sm:$0xff]  ;;  %v656_v11 = vld [vmem:[%s2615_s4 + $0xc0] sm:$0xff]  ;;  %v657_v12 = vld [vmem:[%s2615_s4 + $0xc8] sm:$0xff] }
  0x47   :  { %v658_v13 = vld [vmem:[%s2615_s4 + $0xd0] sm:$0xff]  ;;  %v659_v14 = vld [vmem:[%s2615_s4 + $0xd8] sm:$0xff]  ;;  %v660_v15 = vld [vmem:[%s2615_s4 + $0xe0] sm:$0xff] }
  0x48   :  { %v1177_v16 = vld [vmem:[%s2616_s5] sm:$0xff]  ;;  %v1178_v17 = vld [vmem:[%s2616_s5 + $0x8] sm:$0xff]  ;;  %v1179_v18 = vld [vmem:[%s2616_s5 + $0x10] sm:$0xff] }
  0x49   :  { %676 = vperm.xlu0 %1744, %v634_v53   ;;  %681 = vperm.xlu1 %1745, %v635_v54   ;;  %v1180_v19 = vld [vmem:[%s2616_s5 + $0x18] sm:$0xff]  ;;  %v1181_v20 = vld [vmem:[%s2616_s5 + $0x20] sm:$0xff]  ;;  %v1182_v21 = vld [vmem:[%s2616_s5 + $0x28] sm:$0xff] }
  0x4a   :  { %v1183_v22 = vld [vmem:[%s2616_s5 + $0x30] sm:$0xff]  ;;  %v1184_v23 = vld [vmem:[%s2616_s5 + $0x38] sm:$0xff]  ;;  %v1185_v24 = vld [vmem:[%s2616_s5 + $0x40] sm:$0xff] }
  0x4b   :  { %v1186_v25 = vld [vmem:[%s2616_s5 + $0x48] sm:$0xff]  ;;  %v1187_v26 = vld [vmem:[%s2616_s5 + $0x50] sm:$0xff]  ;;  %v1188_v27 = vld [vmem:[%s2616_s5 + $0x58] sm:$0xff] }
  0x4c   :  { %v1189_v28 = vld [vmem:[%s2616_s5 + $0x60] sm:$0xff]  ;;  %v1190_v29 = vld [vmem:[%s2616_s5 + $0x68] sm:$0xff]  ;;  %v1191_v30 = vld [vmem:[%s2616_s5 + $0x70] sm:$0xff] }
  0x4d   :  { %686 = vperm.xlu0 %1744, %v636_v55   ;;  %691 = vperm.xlu1 %1745, %v637_v56   ;;  %v1192_v31 = vld [vmem:[%s2616_s5 + $0x78] sm:$0xff]  ;;  %v1193_v32 = vld [vmem:[%s2616_s5 + $0x80] sm:$0xff]  ;;  %v1194_v35 = vld [vmem:[%s2616_s5 + $0x88] sm:$0xff] }
  0x4e   :  { %v1195_v36 = vld [vmem:[%s2616_s5 + $0x90] sm:$0xff]  ;;  %v1196_v38 = vld [vmem:[%s2616_s5 + $0x98] sm:$0xff]  ;;  %v1197_v39 = vld [vmem:[%s2616_s5 + $0xa0] sm:$0xff] }
  0x4f   :  { %v1765_v41 = vld [vmem:[%s2614_s3 + $0x4] ss:$8 sps:$4 sm:$0xff]   ;;  %v1199_v43 = vld [vmem:[%s2616_s5 + $0xb0] sm:$0xff]  ;;  %v1200_v47 = vld [vmem:[%s2616_s5 + $0xb8] sm:$0xff] }
  0x50   :  { %v1198_v42 = vld [vmem:[%s2616_s5 + $0xa8] sm:$0xff]  ;;  %v1768_v44 = vld [vmem:[%s2614_s3 + $0x54] ss:$8 sps:$4 sm:$0xff]   ;;  %1016 = vmatprep.mubr.bf16.mxu0 %v1765_v41  ;;  %v1201_v48 = vld [vmem:[%s2616_s5 + $0xc0] sm:$0xff] }
  0x51   :  { %696 = vperm.xlu0 %1744, %v638_v57   ;;  %701 = vperm.xlu1 %1745, %v639_v58   ;;  %v1202_v50 = vld [vmem:[%s2616_s5 + $0xc8] sm:$0xff]  ;;  %v1203_v51 = vld [vmem:[%s2616_s5 + $0xd0] sm:$0xff]  ;;  %v1204_v54 = vld [vmem:[%s2616_s5 + $0xd8] sm:$0xff] }
  0x52   :  { %1056 = vmatprep.mubr.bf16.mxu1 %v1768_v44  ;;  %v661_v53 = vld [vmem:[%s2615_s4 + $0xe8] sm:$0xff]  ;;  %v662_v57 = vld [vmem:[%s2615_s4 + $0xf0] sm:$0xff]  ;;  %v1205_v58 = vld [vmem:[%s2616_s5 + $0xe0] sm:$0xff] }
  0x55   :  { %706 = vperm.xlu0 %1744, %v640_v59   ;;  %711 = vperm.xlu1 %1745, %v641_v60   ;;  %v663_v60 = vld [vmem:[%s2615_s4 + $0xf8] sm:$0xff] }
  0x59   :  { %716 = vperm.xlu0 %1744, %v642_v61   ;;  %721 = vperm.xlu1 %1745, %v643_v62   ;;  %v1206_v61 = vld [vmem:[%s2616_s5 + $0xe8] sm:$0xff] }
  0x5d   :  { %726 = vperm.xlu0 %1744, %v644_v63   ;;  %731 = vperm.xlu1 %1745, %v645_v0   ;;  %v1207_v63 = vld [vmem:[%s2616_s5 + $0xf0] sm:$0xff]  ;;  %v1208_v0 = vld [vmem:[%s2616_s5 + $0xf8] sm:$0xff] }
  0x61   :  { %736 = vperm.xlu0 %1744, %v646_v1   ;;  %741 = vperm.xlu1 %1745, %v647_v2  }
  0x65   :  { %746 = vperm.xlu0 %1744, %v648_v3   ;;  %751 = vperm.xlu1 %1745, %v649_v4   ;;  %v1471_v3 = vld [vmem:[#allocation2] sm:$0x1] }
  0x69   :  { %756 = vperm.xlu0 %1744, %v650_v5   ;;  %761 = vperm.xlu1 %1745, %v651_v6  }
  0x6d   :  { %766 = vperm.xlu0 %1744, %v652_v7   ;;  %771 = vperm.xlu1 %1745, %v653_v8  }
  0x71   :  { %776 = vperm.xlu0 %1744, %v654_v9   ;;  %781 = vperm.xlu1 %1745, %v655_v10  }
  0x75   :  { %786 = vperm.xlu0 %1744, %v656_v11   ;;  %791 = vperm.xlu1 %1745, %v657_v12  }
  0x79   :  { %796 = vperm.xlu0 %1744, %v658_v13   ;;  %801 = vperm.xlu1 %1745, %v659_v14  }
  0x7d   :  { %806 = vperm.xlu0 %1744, %v660_v15   ;;  %1211 = vperm.xlu1 %1745, %v1177_v16  }
  0x81   :  { %1216 = vperm.xlu0 %1744, %v1178_v17   ;;  %1221 = vperm.xlu1 %1745, %v1179_v18  }
  0x84   :  { %v2181_v33 = vpop.permute.xlu0 %178  ;;  %v2183_v34 = vpop.permute.xlu1 %98 }
  0x85   :  { %1226 = vperm.xlu0 %1744, %v1180_v19   ;;  %1231 = vperm.xlu1 %1745, %v1181_v20  }
  0x88   :  { %v2191_v37 = vpop.permute.xlu0 %183  ;;  %v2199_v40 = vpop.permute.xlu1 %103 }
  0x89   :  { %1236 = vperm.xlu0 %1744, %v1182_v21   ;;  %1241 = vperm.xlu1 %1745, %v1183_v22  }
  0x8c   :  { %v2213_v45 = vpop.permute.xlu0 %188  ;;  %v2215_v46 = vpop.permute.xlu1 %193 }
  0x8d   :  { %1246 = vperm.xlu0 %1744, %v1184_v23   ;;  %1251 = vperm.xlu1 %1745, %v1185_v24  }
  0x90   :  { %v109_v49 = vpop.permute.xlu0 %108  ;;  %v114_v52 = vpop.permute.xlu1 %113 }
  0x91   :  { %1256 = vperm.xlu0 %1744, %v1186_v25   ;;  %1261 = vperm.xlu1 %1745, %v1187_v26  }
  0x94   :  { %v2235_v55 = vpop.permute.xlu0 %198  ;;  %v2237_v56 = vpop.permute.xlu1 %203 }
  0x95   :  { %1266 = vperm.xlu0 %1744, %v1188_v27   ;;  %1271 = vperm.xlu1 %1745, %v1189_v28  }
  0x98   :  { %v119_v59 = vpop.permute.xlu0 %118  ;;  %v124_v62 = vpop.permute.xlu1 %123 }
  0x99   :  { %1276 = vperm.xlu0 %1744, %v1190_v29   ;;  %1281 = vperm.xlu1 %1745, %v1191_v30  }
  0x9c   :  { %v2257_v1 = vpop.permute.xlu0 %208  ;;  %v2259_v2 = vpop.permute.xlu1 %213 }
  0x9d   :  { %1286 = vperm.xlu0 %1744, %v1192_v31   ;;  %1291 = vperm.xlu1 %1745, %v1193_v32  }
  0xa0   :  { %v129_v4 = vpop.permute.xlu0 %128  ;;  %v134_v5 = vpop.permute.xlu1 %133 }
  0xa1   :  { %1296 = vperm.xlu0 %1744, %v1194_v35   ;;  %1301 = vperm.xlu1 %1745, %v1195_v36  }
  0xa4   :  { %v2261_v6 = vpop.permute.xlu0 %218  ;;  %v2263_v7 = vpop.permute.xlu1 %223 }
  0xa5   :  { %1306 = vperm.xlu0 %1744, %v1196_v38   ;;  %1311 = vperm.xlu1 %1745, %v1197_v39  }
  0xa8   :  { %v139_v8 = vpop.permute.xlu0 %138  ;;  %v144_v9 = vpop.permute.xlu1 %143 }
  0xa9   :  { %1316 = vperm.xlu0 %1744, %v1198_v42   ;;  %1321 = vperm.xlu1 %1745, %v1199_v43  }
  0xac   :  { %v2265_v10 = vpop.permute.xlu0 %228  ;;  %v2267_v11 = vpop.permute.xlu1 %233 }
  0xad   :  { %1326 = vperm.xlu0 %1744, %v1200_v47   ;;  %1331 = vperm.xlu1 %1745, %v1201_v48  }
  0xb0   :  { %v149_v12 = vpop.permute.xlu0 %148  ;;  %v154_v16 = vpop.permute.xlu1 %153 }
  0xb1   :  { %1336 = vperm.xlu0 %1744, %v1202_v50   ;;  %1341 = vperm.xlu1 %1745, %v1203_v51  }
  0xb4   :  { %v2271_v24 = vpop.permute.xlu0 %238  ;;  %v2275_v28 = vpop.permute.xlu1 %243 }
  0xb5   :  { %811 = vperm.xlu0 %1744, %v661_v53   ;;  %1346 = vperm.xlu1 %1745, %v1204_v54  }
  0xb8   :  { %v159_v38 = vpop.permute.xlu0 %158  ;;  %v164_v43 = vpop.permute.xlu1 %163 }
  0xb9   :  { %816 = vperm.xlu0 %1744, %v662_v57   ;;  %1351 = vperm.xlu1 %1745, %v1205_v58  }
  0xbc   :  { %v2283_v53 = vpop.permute.xlu0 %248 }
  0xbd   :  { %821 = vperm.xlu0 %1744, %v663_v60   ;;  %1356 = vperm.xlu1 %1745, %v1206_v61  }
  0xc1   :  { %1361 = vperm.xlu0 %1744, %v1207_v63   ;;  %1366 = vperm.xlu1 %1745, %v1208_v0  }
  0xc5   :  { %1474 = vperm.xlu0 %1744, %v1471_v3  }
  0xdd   :  { %v1696_v13 = vpop.f32.mrb[0].mxu0 }
  0xde   :  { %v434_v14 = vadd.f32 %v1696_v13, %v109_v49  ;;  %v425_v15 = vpop.f32.mrb[1].mxu0 }
  0xdf   :  { %v1697_v17 = vpop.f32.mrb[2].mxu0  ;;  %v426_v18 = vadd.f32 %v425_v15, %v2183_v34 }
  0xe0   :  { %v437_v19 = vadd.f32 %v1697_v17, %v114_v52  ;;  %v428_v20 = vpop.f32.mrb[3].mxu0  ;;  %v554_v21 = vmax.f32 %v434_v14, 0.0 }
  0xe1   :  { %v429_v23 = vadd.f32 %v428_v20, %v2199_v40  ;;  %v552_v25 = vmax.f32 %v426_v18, 0.0 }
  0xe2   :  { %v555_v22 = vmax.f32 %v437_v19, 0.0 }
  0xe3   :  { %v553_v27 = vmax.f32 %v429_v23, 0.0 }
  0xe4   :  { %v2273_v26 = vpack.c.bf16 %v555_v22, %v554_v21 }
  0xe5   :  { %v1700_v29 = vpop.f32.mrb[4].mxu0  ;;  %v2277_v30 = vpack.c.bf16 %v553_v27, %v552_v25 }
  0xe6   :  { %v450_v31 = vadd.f32 %v1700_v29, %v129_v4  ;;  %v441_v32 = vpop.f32.mrb[5].mxu0 }
  0xe7   :  { %v1701_v34 = vpop.f32.mrb[6].mxu0  ;;  %v442_v35 = vadd.f32 %v441_v32, %v119_v59  ;;  %v2285_v59 = vpop.permute.xlu1 %253 }
  0xe8   :  { %v453_v36 = vadd.f32 %v1701_v34, %v134_v5  ;;  %v444_v39 = vpop.f32.mrb[7].mxu0  ;;  %v558_v41 = vmax.f32 %v450_v31, 0.0  ;;  %v169_v5 = vpop.permute.xlu0 %168 }
  0xe9   :  { %v445_v42 = vadd.f32 %v444_v39, %v124_v62  ;;  %v556_v44 = vmax.f32 %v442_v35, 0.0 }
  0xea   :  { %v559_v40 = vmax.f32 %v453_v36, 0.0 }
  0xeb   :  { %v557_v48 = vmax.f32 %v445_v42, 0.0  ;;  %v174_v17 = vpop.permute.xlu1 %173 }
  0xec   :  { %v2279_v47 = vpack.c.bf16 %v559_v40, %v558_v41 }
  0xed   :  { %v1704_v49 = vpop.f32.mrb[8].mxu0  ;;  %v2281_v50 = vpack.c.bf16 %v557_v48, %v556_v44 }
  0xee   :  { %v466_v51 = vadd.f32 %v1704_v49, %v149_v12  ;;  %v457_v52 = vpop.f32.mrb[9].mxu0 }
  0xef   :  { %v1705_v54 = vpop.f32.mrb[10].mxu0  ;;  %v458_v57 = vadd.f32 %v457_v52, %v139_v8 }
  0xf0   :  { %v469_v58 = vadd.f32 %v1705_v54, %v154_v16  ;;  %v460_v60 = vpop.f32.mrb[11].mxu0  ;;  %v562_v61 = vmax.f32 %v466_v51, 0.0 }
  0xf1   :  { %v461_v63 = vadd.f32 %v460_v60, %v144_v9  ;;  %v560_v0 = vmax.f32 %v458_v57, 0.0 }
  0xf2   :  { %v563_v62 = vmax.f32 %v469_v58, 0.0 }
  0xf3   :  { %v561_v4 = vmax.f32 %v461_v63, 0.0 }
  0xf4   :  { %v2287_v3 = vpack.c.bf16 %v563_v62, %v562_v61 }
  0xf5   :  { %v1708_v13 = vpop.f32.mrb[12].mxu0  ;;  %v2289_v14 = vpack.c.bf16 %v561_v4, %v560_v0 }
  0xf6   :  { %v482_v12 = vadd.f32 %v1708_v13, %v169_v5  ;;  %v473_v15 = vpop.f32.mrb[13].mxu0 }
  0xf7   :  { %v1709_v18 = vpop.f32.mrb[14].mxu0  ;;  %v474_v8 = vadd.f32 %v473_v15, %v159_v38 }
  0xf8   :  { %v485_v16 = vadd.f32 %v1709_v18, %v174_v17  ;;  %v476_v19 = vpop.f32.mrb[15].mxu0  ;;  %v566_v20 = vmax.f32 %v482_v12, 0.0 }
  0xf9   :  { %v477_v22 = vadd.f32 %v476_v19, %v164_v43  ;;  %v564_v23 = vmax.f32 %v474_v8, 0.0 }
  0xfa   :  { %v567_v21 = vmax.f32 %v485_v16, 0.0 }
  0xfb   :  { %v565_v25 = vmax.f32 %v477_v22, 0.0 }
  0xfc   :  { %v2291_v9 = vpack.c.bf16 %v567_v21, %v566_v20 }
  0xfd   :  { %v1712_v27 = vpop.f32.mrb[16].mxu0  ;;  %v2293_v29 = vpack.c.bf16 %v565_v25, %v564_v23  ;;  %v1773_v23 = vld [vmem:[%s2614_s3 + $0x10] ss:$8 sps:$4 sm:$0xff]   ;;  %v1775_v25 = vld [vmem:[%s2614_s3 + $0x24] ss:$8 sps:$4 sm:$0xff]  }
  0xfe   :  { %v498_v31 = vadd.f32 %v1712_v27, %v2213_v45  ;;  %v489_v32 = vpop.f32.mrb[17].mxu0  ;;  %v1777_v27 = vld [vmem:[%s2614_s3 + $0x74] ss:$8 sps:$4 sm:$0xff]  }
  0xff   :  { %v1713_v34 = vpop.f32.mrb[18].mxu0  ;;  %v490_v35 = vadd.f32 %v489_v32, %v2181_v33  ;;  %v1781_v32 = vld [vmem:[%s2614_s3 + $0x34] ss:$8 sps:$4 sm:$0xff]  }
 0x100   :  { %v501_v36 = vadd.f32 %v1713_v34, %v2215_v46  ;;  %v492_v38 = vpop.f32.mrb[19].mxu0  ;;  %v570_v39 = vmax.f32 %v498_v31, 0.0  ;;  %v1780_v31 = vld [vmem:[%s2614_s3 + $0x70] ss:$8 sps:$4 sm:$0xff]   ;;  %v1783_v34 = vld [vmem:[%s2614_s3 + $0x84] ss:$8 sps:$4 sm:$0xff]  }
 0x101   :  { %v493_v40 = vadd.f32 %v492_v38, %v2191_v37  ;;  %v568_v42 = vmax.f32 %v490_v35, 0.0  ;;  %v1785_v35 = vld [vmem:[%s2614_s3 + $0x30] ss:$8 sps:$4 sm:$0xff]   ;;  %v1787_v38 = vld [vmem:[%s2614_s3 + $0x44] ss:$8 sps:$4 sm:$0xff]  }
 0x102   :  { %v571_v41 = vmax.f32 %v501_v36, 0.0  ;;  %v1786_v36 = vld [vmem:[%s2614_s3 + $0x80] ss:$8 sps:$4 sm:$0xff]  }
 0x103   :  { %v569_v44 = vmax.f32 %v493_v40, 0.0  ;;  %v1792_v40 = vld [vmem:[%s2614_s3 + $0x90] ss:$8 sps:$4 sm:$0xff]  }
 0x104   :  { %v625_v43 = vpack.c.bf16 %v571_v41, %v570_v39  ;;  %v1789_v39 = vld [vmem:[%s2614_s3 + $0x94] ss:$8 sps:$4 sm:$0xff]   ;;  %v1791_v41 = vld [vmem:[%s2614_s3 + $0x40] ss:$8 sps:$4 sm:$0xff]  }
 0x105   :  { %v1716_v48 = vpop.f32.mrb[20].mxu0  ;;  %v624_v49 = vpack.c.bf16 %v569_v44, %v568_v42  ;;  %v1793_v42 = vld [vmem:[%s2614_s3 + $0xa4] ss:$8 sps:$4 sm:$0xff]   ;;  %v1796_v44 = vld [vmem:[%s2614_s3 + $0xb4] ss:$8 sps:$4 sm:$0xff]  }
 0x106   :  { %v514_v51 = vadd.f32 %v1716_v48, %v2257_v1  ;;  %v505_v52 = vpop.f32.mrb[21].mxu0  ;;  %v1798_v48 = vld [vmem:[%s2614_s3 + $0xb0] ss:$8 sps:$4 sm:$0xff]  }
 0x107   :  { %v1717_v45 = vpop.f32.mrb[22].mxu0  ;;  %v506_v54 = vadd.f32 %v505_v52, %v2235_v55  ;;  %1580 = vmatprep.subr.bf16.mxu0 %v624_v49  ;;  %1726 = vmatprep.subr.bf16.mxu1 %v624_v49  ;;  %v1799_v49 = vld [vmem:[%s2614_s3 + $0xc4] ss:$8 sps:$4 sm:$0xff]   ;;  %v1802_v52 = vld [vmem:[%s2614_s3 + $0xd4] ss:$8 sps:$4 sm:$0xff]  }
 0x108   :  { %v517_v33 = vadd.f32 %v1717_v45, %v2259_v2  ;;  %v508_v46 = vpop.f32.mrb[23].mxu0  ;;  %1581 = vmatpush3.bf16.msra.mxu0 %v2277_v30  ;;  %1734 = vmatpush3.bf16.msra.mxu1 %v2277_v30  ;;  %v574_v37 = vmax.f32 %v514_v51, 0.0  ;;  %v1801_v51 = vld [vmem:[%s2614_s3 + $0xc0] ss:$8 sps:$4 sm:$0xff]   ;;  %v1804_v45 = vld [vmem:[%s2614_s3 + $0xd0] ss:$8 sps:$4 sm:$0xff]  }
 0x109   :  { %v509_v58 = vadd.f32 %v508_v46, %v2237_v56  ;;  %1582 = vmatprep.subr.bf16.mxu0 %v625_v43  ;;  %1727 = vmatprep.subr.bf16.mxu1 %v625_v43  ;;  %v572_v1 = vmax.f32 %v506_v54, 0.0  ;;  %v1795_v43 = vld [vmem:[%s2614_s3 + $0xa0] ss:$8 sps:$4 sm:$0xff]   ;;  %v1805_v54 = vld [vmem:[%s2614_s3 + $0xe4] ss:$8 sps:$4 sm:$0xff]  }
 0x10a   :  { %v575_v57 = vmax.f32 %v517_v33, 0.0  ;;  %v1807_v33 = vld [vmem:[%s2614_s3 + $0xe0] ss:$8 sps:$4 sm:$0xff]   ;;  %v1808_v46 = vld [vmem:[%s2614_s3 + $0xf4] ss:$8 sps:$4 sm:$0xff]  }
 0x10b   :  { %v573_v61 = vmax.f32 %v509_v58, 0.0  ;;  %v672_v58 = vpop.permute.xlu1 %671 }
 0x10c   :  { %v627_v60 = vpack.c.bf16 %v575_v57, %v574_v37  ;;  %1583 = vmatpush3.bf16.msra.mxu0 %v2273_v26  ;;  %1735 = vmatpush3.bf16.msra.mxu1 %v2273_v26  ;;  %v1810_v37 = vld [vmem:[%s2614_s3 + $0xf0] ss:$8 sps:$4 sm:$0xff]   ;;  %v667_v57 = vpop.permute.xlu0 %666 }
 0x10d   :  { %v1720_v55 = vpop.f32.mrb[24].mxu0  ;;  %v626_v2 = vpack.c.bf16 %v573_v61, %v572_v1 }
 0x10e   :  { %v530_v62 = vadd.f32 %v1720_v55, %v2265_v10  ;;  %v521_v63 = vpop.f32.mrb[25].mxu0 }
 0x10f   :  { %v1721_v0 = vpop.f32.mrb[26].mxu0  ;;  %v522_v30 = vadd.f32 %v521_v63, %v2261_v6  ;;  %1584 = vmatprep.subr.bf16.mxu0 %v626_v2  ;;  %1728 = vmatprep.subr.bf16.mxu1 %v626_v2 }
 0x110   :  { %v533_v4 = vadd.f32 %v1721_v0, %v2267_v11  ;;  %v524_v56 = vpop.f32.mrb[27].mxu0  ;;  %1585 = vmatpush3.bf16.msra.mxu0 %v2281_v50  ;;  %1736 = vmatpush3.bf16.msra.mxu1 %v2281_v50  ;;  %v578_v5 = vmax.f32 %v530_v62, 0.0  ;;  %v2417_v1 = vpop.permute.xlu0 %676 }
 0x111   :  { %v525_v26 = vadd.f32 %v524_v56, %v2263_v7  ;;  %1586 = vmatprep.subr.bf16.mxu0 %v627_v60  ;;  %1729 = vmatprep.subr.bf16.mxu1 %v627_v60  ;;  %v576_v10 = vmax.f32 %v522_v30, 0.0  ;;  %v2419_v60 = vpop.permute.xlu1 %681 }
 0x112   :  { %v579_v13 = vmax.f32 %v533_v4, 0.0 }
 0x113   :  { %v577_v15 = vmax.f32 %v525_v26, 0.0 }
 0x114   :  { %v629_v12 = vpack.c.bf16 %v579_v13, %v578_v5  ;;  %1587 = vmatpush3.bf16.msra.mxu0 %v2279_v47  ;;  %1737 = vmatpush3.bf16.msra.mxu1 %v2279_v47  ;;  %v2421_v61 = vpop.permute.xlu0 %686 }
 0x115   :  { %v1724_v6 = vpop.f32.mrb[28].mxu0  ;;  %v628_v11 = vpack.c.bf16 %v577_v15, %v576_v10  ;;  %v2423_v55 = vpop.permute.xlu1 %691 }
 0x116   :  { %v546_v17 = vadd.f32 %v1724_v6, %v2283_v53  ;;  %v537_v18 = vpop.f32.mrb[29].mxu0 }
 0x117   :  { %v1725_v8 = vpop.f32.mrb[30].mxu0  ;;  %v538_v50 = vadd.f32 %v537_v18, %v2271_v24  ;;  %1588 = vmatprep.subr.bf16.mxu0 %v628_v11  ;;  %1730 = vmatprep.subr.bf16.mxu1 %v628_v11 }
 0x118   :  { %v549_v16 = vadd.f32 %v1725_v8, %v2285_v59  ;;  %v540_v7 = vpop.f32.mrb[31].mxu0  ;;  %1589 = vmatpush3.bf16.msra.mxu0 %v2289_v14  ;;  %1738 = vmatpush3.bf16.msra.mxu1 %v2289_v14  ;;  %v582_v19 = vmax.f32 %v546_v17, 0.0  ;;  %v1766_v59 = vld [vmem:[%s2614_s3 + $0x50] ss:$8 sps:$4 sm:$0xff]   ;;  %v1771_v14 = vld [vmem:[%s2614_s3 + $0x64] ss:$8 sps:$4 sm:$0xff]   ;;  %v2425_v2 = vpop.permute.xlu0 %696 }
 0x119   :  { %v541_v47 = vadd.f32 %v540_v7, %v2275_v28  ;;  %1590 = vmatprep.subr.bf16.mxu0 %v629_v12  ;;  %1731 = vmatprep.subr.bf16.mxu1 %v629_v12  ;;  %v580_v53 = vmax.f32 %v538_v50, 0.0  ;;  %v1763_v28 = vld [vmem:[%s2614_s3] ss:$8 sps:$4 sm:$0xff]   ;;  %v2427_v62 = vpop.permute.xlu1 %701 }
 0x11a   :  { %v583_v20 = vmax.f32 %v549_v16, 0.0 }
 0x11b   :  { %v581_v22 = vmax.f32 %v541_v47, 0.0 }
 0x11c   :  { %v631_v21 = vpack.c.bf16 %v583_v20, %v582_v19  ;;  %1591 = vmatpush3.bf16.msra.mxu0 %v2287_v3  ;;  %1739 = vmatpush3.bf16.msra.mxu1 %v2287_v3  ;;  %v1769_v3 = vld [vmem:[%s2614_s3 + $0x14] ss:$8 sps:$4 sm:$0xff]   ;;  %v2429_v63 = vpop.permute.xlu0 %706 }
 0x11d   :  { %v630_v24 = vpack.c.bf16 %v581_v22, %v580_v53  ;;  %v2431_v0 = vpop.permute.xlu1 %711 }
 0x11f   :  { %1592 = vmatprep.subr.bf16.mxu0 %v630_v24  ;;  %1732 = vmatprep.subr.bf16.mxu1 %v630_v24 }
 0x120   :  { %1593 = vmatpush3.bf16.msra.mxu0 %v2293_v29  ;;  %1740 = vmatpush3.bf16.msra.mxu1 %v2293_v29  ;;  %v1779_v29 = vld [vmem:[%s2614_s3 + $0x20] ss:$8 sps:$4 sm:$0xff]   ;;  %v2433_v30 = vpop.permute.xlu0 %716 }
 0x121   :  { %1594 = vmatprep.subr.bf16.mxu0 %v631_v21  ;;  %1733 = vmatprep.subr.bf16.mxu1 %v631_v21  ;;  %v2435_v4 = vpop.permute.xlu1 %721 }
 0x124   :  { %1595 = vmatpush3.bf16.msra.mxu0 %v2291_v9  ;;  %1741 = vmatpush3.bf16.msra.mxu1 %v2291_v9  ;;  %v1774_v9 = vld [vmem:[%s2614_s3 + $0x60] ss:$8 sps:$4 sm:$0xff]   ;;  %v2437_v56 = vpop.permute.xlu0 %726  ;;  %s1836_s3 = smov [#allocation3]  }
 0x125   :  { %v2439_v5 = vpop.permute.xlu1 %731  ;;  %s1490_s21 = sshll.u32 %s1836_s3, 4  ;;  %s1491_s21 = int_to_ptr.vmem [resolvable:$true] %s1490_s21 }
 0x126   :  { %s1811_s22 = scalar_lea.vmem %s1491_s21, 16  ;;  %s1815_s23 = scalar_lea.vmem %s1491_s21, 32 }
 0x127   :  { %1017 = vmatmul.mubr.bf16.vlgmr.msra.gmra.mrb[32].mxu0 %v1763_v28  ;;  %1057 = vmatmul.mubr.bf16.vlgmr.msra.gmra.mrb[0].mxu1 %v1766_v59  ;;  %p1812_p0 = scmp.ne.s32.totalorder %s1491_s21, %s1811_s22  ;;  %p1816_p1 = scmp.lt.s32.totalorder %s1491_s21, %s1491_s21 }
 0x128   :  { %1024 = vmatprep.mubr.bf16.mxu0 %v1769_v3  ;;  %1064 = vmatprep.mubr.bf16.mxu1 %v1771_v14  ;;  %v2441_v13 = vpop.permute.xlu0 %736  ;;  %p1817_p2 = scmp.lt.s32.totalorder %s1815_s23, %s1811_s22 }
 0x129   :  { %v2443_v26 = vpop.permute.xlu1 %741 }
 0x12a   :  { %p1818_p3 = por %p1817_p2, %p1816_p1 }
 0x12c   :  { %v2445_v10 = vpop.permute.xlu0 %746  ;;  %p1819_p4 = pnand %p1818_p3, %p1812_p0 }
 0x12d   :  { %v2447_v12 = vpop.permute.xlu1 %751 }
 0x12f   :  { %1025 = vmatmul.mubr.bf16.gmra.mrb[36].mxu0 %v1773_v23  ;;  %1065 = vmatmul.mubr.bf16.gmra.mrb[4].mxu1 %v1774_v9 }
 0x130   :  { %1032 = vmatprep.mubr.bf16.mxu0 %v1775_v25  ;;  %1072 = vmatprep.mubr.bf16.mxu1 %v1777_v27  ;;  %v2449_v15 = vpop.permute.xlu0 %756 }
 0x131   :  { %v2451_v6 = vpop.permute.xlu1 %761 }
 0x134   :  { %v2453_v11 = vpop.permute.xlu0 %766 }
 0x135   :  { %v2455_v17 = vpop.permute.xlu1 %771 }
 0x137   :  { %1033 = vmatmul.mubr.bf16.gmra.mrb[40].mxu0 %v1779_v29  ;;  %1073 = vmatmul.mubr.bf16.gmra.mrb[8].mxu1 %v1780_v31 }
 0x138   :  { %1040 = vmatprep.mubr.bf16.mxu0 %v1781_v32  ;;  %1080 = vmatprep.mubr.bf16.mxu1 %v1783_v34  ;;  %v2457_v18 = vpop.permute.xlu0 %776 }
 0x139   :  { %v2459_v8 = vpop.permute.xlu1 %781 }
 0x13c   :  { %v2461_v50 = vpop.permute.xlu0 %786 }
 0x13d   :  { %v2463_v16 = vpop.permute.xlu1 %791 }
 0x13f   :  { %1041 = vmatmul.mubr.bf16.gmra.mrb[44].mxu0 %v1785_v35  ;;  %1081 = vmatmul.mubr.bf16.gmra.mrb[12].mxu1 %v1786_v36 }
 0x140   :  { %1048 = vmatprep.mubr.bf16.mxu0 %v1787_v38  ;;  %1088 = vmatprep.mubr.bf16.mxu1 %v1789_v39  ;;  %v2465_v7 = vpop.permute.xlu0 %796 }
 0x141   :  { %v2467_v19 = vpop.permute.xlu1 %801 }
 0x144   :  { %v2469_v20 = vpop.permute.xlu0 %806 }
 0x145   :  { %v1212_v47 = vpop.permute.xlu1 %1211 }
 0x147   :  { %1049 = vmatmul.mubr.bf16.gmra.mrb[48].mxu0 %v1791_v41  ;;  %1089 = vmatmul.mubr.bf16.gmra.mrb[16].mxu1 %v1792_v40 }
 0x148   :  { %1096 = vmatprep.mubr.bf16.mxu1 %v1793_v42  ;;  %v1217_v53 = vpop.permute.xlu0 %1216 }
 0x149   :  { %v1222_v21 = vpop.permute.xlu1 %1221 }
 0x14c   :  { %v1227_v22 = vpop.permute.xlu0 %1226 }
 0x14d   :  { %v2471_v24 = vpop.permute.xlu1 %1231 }
 0x14f   :  { %1097 = vmatmul.mubr.bf16.gmra.mrb[20].mxu1 %v1795_v43 }
 0x150   :  { %1104 = vmatprep.mubr.bf16.mxu1 %v1796_v44  ;;  %v2473_v28 = vpop.permute.xlu0 %1236 }
 0x151   :  { %v2475_v59 = vpop.permute.xlu1 %1241 }
 0x154   :  { %v2477_v3 = vpop.permute.xlu0 %1246 }
 0x155   :  { %v2479_v14 = vpop.permute.xlu1 %1251 }
 0x157   :  { %1105 = vmatmul.mubr.bf16.gmra.mrb[24].mxu1 %v1798_v48 }
 0x158   :  { %1112 = vmatprep.mubr.bf16.mxu1 %v1799_v49  ;;  %v2485_v43 = vpop.permute.xlu0 %1256 }
 0x159   :  { %v2487_v44 = vpop.permute.xlu1 %1261 }
 0x15f   :  { %1113 = vmatmul.mubr.bf16.gmra.mrb[28].mxu1 %v1801_v51 }
 0x160   :  { %1120 = vmatprep.mubr.bf16.mxu1 %v1802_v52 }
 0x167   :  { %1121 = vmatmul.mubr.bf16.gmra.mrb[32].mxu1 %v1804_v45 }
 0x168   :  { %1128 = vmatprep.mubr.bf16.mxu1 %v1805_v54 }
 0x16f   :  { %1129 = vmatmul.mubr.bf16.gmra.mrb[36].mxu1 %v1807_v33 }
 0x170   :  { %1136 = vmatprep.mubr.bf16.mxu1 %v1808_v46 }
 0x177   :  { %1137 = vmatmul.mubr.bf16.gmra.mrb[40].mxu1 %v1810_v37 }
 0x1fa   :  { %v1596_v23 = vpop.f32.mrb[32].mxu0  ;;  %v1626_v9 = vpop.f32.mrb[0].mxu1 }
 0x1fb   :  { %v1597_v25 = vpop.f32.mrb[33].mxu0  ;;  %v1627_v27 = vpop.f32.mrb[1].mxu1 }
 0x1fc   :  { %v1598_v29 = vadd.f32 %v1597_v25, %v1596_v23  ;;  %v2481_v31 = vadd.f32 %v1627_v27, %v1626_v9  ;;  %v1599_v32 = vpop.f32.mrb[34].mxu0  ;;  %v1629_v34 = vpop.f32.mrb[2].mxu1 }
 0x1fd   :  { %v1600_v35 = vpop.f32.mrb[35].mxu0  ;;  %v1630_v36 = vpop.f32.mrb[3].mxu1 }
 0x1fe   :  { %v1019_v38 = vadd.f32 %v1598_v29, %v667_v57  ;;  %v1601_v39 = vadd.f32 %v1600_v35, %v1599_v32  ;;  %v2483_v41 = vadd.f32 %v1630_v36, %v1629_v34  ;;  %v2499_v36 = vpop.permute.xlu1 %1271 }
 0x200   :  { %v1145_v40 = vmax.f32 %v1019_v38, 0.0  ;;  %v1022_v42 = vadd.f32 %v1601_v39, %v672_v58 }
 0x202   :  { %v1369_v48 = vmul.f32 %v1212_v47, %v1145_v40  ;;  %v1146_v49 = vmax.f32 %v1022_v42, 0.0  ;;  %v1602_v51 = vpop.f32.mrb[36].mxu0  ;;  %v1632_v52 = vpop.f32.mrb[4].mxu1 }
 0x203   :  { %v1603_v45 = vpop.f32.mrb[37].mxu0  ;;  %v1633_v54 = vpop.f32.mrb[5].mxu1 }
 0x204   :  { %v1370_v33 = vmul.f32 %v1217_v53, %v1146_v49  ;;  %v1605_v46 = vpop.f32.mrb[38].mxu0  ;;  %v1635_v37 = vpop.f32.mrb[6].mxu1  ;;  %v1604_v57 = vadd.f32 %v1603_v45, %v1602_v51  ;;  %v2489_v23 = vadd.f32 %v1633_v54, %v1632_v52  ;;  %v1402_v58 = vsel %vm1401_vm1, %v1369_v48, 0.0 }
 0x205   :  { %v1606_v9 = vpop.f32.mrb[39].mxu0  ;;  %v1636_v25 = vpop.f32.mrb[7].mxu1 }
 0x206   :  { %v1403_v27 = vsel %vm1401_vm1, %v1370_v33, 0.0  ;;  %v1607_v29 = vadd.f32 %v1606_v9, %v1605_v46  ;;  %v2493_v47 = vadd.f32 %v1636_v25, %v1635_v37  ;;  %v1027_v34 = vadd.f32 %v1604_v57, %v2417_v1  ;;  %v2497_v53 = vpop.permute.xlu0 %1266 }
 0x207   :  { %v1404_v32 = vadd.f32 %v1403_v27, %v1402_v58 }
 0x208   :  { %v1030_v35 = vadd.f32 %v1607_v29, %v2419_v60  ;;  %v1147_v38 = vmax.f32 %v1027_v34, 0.0  ;;  %v2510_v34 = vpop.permute.xlu1 %1281 }
 0x20a   :  { %v1148_v39 = vmax.f32 %v1030_v35, 0.0  ;;  %v1608_v40 = vpop.f32.mrb[40].mxu0  ;;  %v1638_v42 = vpop.f32.mrb[8].mxu1  ;;  %v1371_v49 = vmul.f32 %v1222_v21, %v1147_v38 }
 0x20b   :  { %v1609_v48 = vpop.f32.mrb[41].mxu0  ;;  %v1639_v51 = vpop.f32.mrb[9].mxu1 }
 0x20c   :  { %v1372_v52 = vmul.f32 %v1227_v22, %v1148_v39  ;;  %v1610_v45 = vadd.f32 %v1609_v48, %v1608_v40  ;;  %v2501_v54 = vadd.f32 %v1639_v51, %v1638_v42  ;;  %v1611_v33 = vpop.f32.mrb[42].mxu0  ;;  %v1641_v46 = vpop.f32.mrb[10].mxu1  ;;  %v1405_v1 = vsel %vm1401_vm1, %v1371_v49, 0.0 }
 0x20d   :  { %v1612_v60 = vpop.f32.mrb[43].mxu0  ;;  %v1642_v37 = vpop.f32.mrb[11].mxu1  ;;  %v1406_v57 = vadd.f32 %v1405_v1, %v1404_v32 }
 0x20e   :  { %v1407_v9 = vsel %vm1401_vm1, %v1372_v52, 0.0  ;;  %v1035_v25 = vadd.f32 %v1610_v45, %v2421_v61  ;;  %v1613_v58 = vadd.f32 %v1612_v60, %v1611_v33  ;;  %v2506_v27 = vadd.f32 %v1642_v37, %v1641_v46  ;;  %v2508_v22 = vpop.permute.xlu0 %1276 }
 0x20f   :  { %v1408_v21 = vadd.f32 %v1407_v9, %v1406_v57 }
 0x210   :  { %v1149_v29 = vmax.f32 %v1035_v25, 0.0  ;;  %v1038_v35 = vadd.f32 %v1613_v58, %v2423_v55 }
 0x212   :  { %v1373_v38 = vmul.f32 %v2471_v24, %v1149_v29  ;;  %v1614_v39 = vpop.f32.mrb[44].mxu0  ;;  %v1644_v40 = vpop.f32.mrb[12].mxu1  ;;  %v1150_v32 = vmax.f32 %v1038_v35, 0.0 }
 0x213   :  { %v1615_v42 = vpop.f32.mrb[45].mxu0  ;;  %v1645_v49 = vpop.f32.mrb[13].mxu1 }
 0x214   :  { %v1409_v61 = vsel %vm1401_vm1, %v1373_v38, 0.0  ;;  %v1616_v48 = vadd.f32 %v1615_v42, %v1614_v39  ;;  %v2515_v51 = vadd.f32 %v1645_v49, %v1644_v40  ;;  %v1617_v52 = vpop.f32.mrb[46].mxu0  ;;  %v1647_v45 = vpop.f32.mrb[14].mxu1  ;;  %v1374_v46 = vmul.f32 %v2473_v28, %v1150_v32 }
 0x215   :  { %v1410_v33 = vadd.f32 %v1409_v61, %v1408_v21  ;;  %v1618_v1 = vpop.f32.mrb[47].mxu0  ;;  %v1648_v60 = vpop.f32.mrb[15].mxu1 }
 0x216   :  { %v1043_v55 = vadd.f32 %v1616_v48, %v2425_v2  ;;  %v1619_v24 = vadd.f32 %v1618_v1, %v1617_v52  ;;  %v2519_v37 = vadd.f32 %v1648_v60, %v1647_v45  ;;  %v1411_v57 = vsel %vm1401_vm1, %v1374_v46, 0.0  ;;  %v2523_v29 = vpop.permute.xlu0 %1286  ;;  %v2525_v35 = vpop.permute.xlu1 %1291 }
 0x217   :  { %v1412_v9 = vadd.f32 %v1411_v57, %v1410_v33  ;;  %v1059_v2 = vadd.f32 %v2481_v31, %v2433_v30  ;;  %v1062_v52 = vadd.f32 %v2483_v41, %v2435_v4 }
 0x218   :  { %v1151_v25 = vmax.f32 %v1043_v55, 0.0  ;;  %v1046_v58 = vadd.f32 %v1619_v24, %v2427_v62 }
 0x219   :  { %v1155_v55 = vmax.f32 %v1059_v2, 0.0 }
 0x21a   :  { %v1375_v21 = vmul.f32 %v2475_v59, %v1151_v25  ;;  %v1152_v28 = vmax.f32 %v1046_v58, 0.0  ;;  %v1620_v38 = vpop.f32.mrb[48].mxu0  ;;  %v1650_v39 = vpop.f32.mrb[16].mxu1  ;;  %v1156_v58 = vmax.f32 %v1062_v52, 0.0 }
 0x21b   :  { %v1621_v40 = vpop.f32.mrb[49].mxu0  ;;  %v1651_v32 = vpop.f32.mrb[17].mxu1 }
 0x21c   :  { %v1413_v42 = vsel %vm1401_vm1, %v1375_v21, 0.0  ;;  %v1376_v49 = vmul.f32 %v2477_v3, %v1152_v28  ;;  %v1622_v61 = vadd.f32 %v1621_v40, %v1620_v38  ;;  %v1623_v62 = vpop.f32.mrb[50].mxu0  ;;  %v1653_v48 = vpop.f32.mrb[18].mxu1  ;;  %v1652_v59 = vadd.f32 %v1651_v32, %v1650_v39 }
 0x21d   :  { %v1414_v45 = vadd.f32 %v1413_v42, %v1412_v9  ;;  %v1624_v33 = vpop.f32.mrb[51].mxu0  ;;  %v1654_v46 = vpop.f32.mrb[19].mxu1  ;;  %v1067_v3 = vadd.f32 %v2489_v23, %v2437_v56  ;;  %v1070_v9 = vadd.f32 %v2493_v47, %v2439_v5  ;;  %v1379_v38 = vmul.f32 %v2487_v44, %v1155_v55 }
 0x21e   :  { %v1415_v1 = vsel %vm1401_vm1, %v1376_v49, 0.0  ;;  %v1051_v30 = vadd.f32 %v1622_v61, %v2429_v63  ;;  %v1625_v31 = vadd.f32 %v1624_v33, %v1623_v62  ;;  %v1655_v60 = vadd.f32 %v1654_v46, %v1653_v48  ;;  %v2538_v57 = vpop.permute.xlu0 %1296  ;;  %v2541_v41 = vpop.permute.xlu1 %1301 }
 0x21f   :  { %v1416_v24 = vadd.f32 %v1415_v1, %v1414_v45  ;;  %v1157_v39 = vmax.f32 %v1067_v3, 0.0  ;;  %v1075_v23 = vadd.f32 %v2501_v54, %v2441_v13  ;;  %v1158_v42 = vmax.f32 %v1070_v9, 0.0 }
 0x220   :  { %v1153_v25 = vmax.f32 %v1051_v30, 0.0  ;;  %v1054_v4 = vadd.f32 %v1625_v31, %v2431_v0  ;;  %v1078_v44 = vadd.f32 %v2506_v27, %v2443_v26  ;;  %v1083_v13 = vadd.f32 %v2515_v51, %v2445_v10 }
 0x221   :  { %v1381_v52 = vmul.f32 %v2499_v36, %v1157_v39  ;;  %v1159_v45 = vmax.f32 %v1075_v23, 0.0  ;;  %v1382_v33 = vmul.f32 %v2508_v22, %v1158_v42  ;;  %v1086_v26 = vadd.f32 %v2519_v37, %v2447_v12 }
 0x222   :  { %v1377_v63 = vmul.f32 %v2479_v14, %v1153_v25  ;;  %v1154_v21 = vmax.f32 %v1054_v4, 0.0  ;;  %v1656_v28 = vpop.f32.mrb[20].mxu1  ;;  %v1307_v49 = vpop.permute.xlu0 %1306  ;;  %v1380_v14 = vmul.f32 %v2497_v53, %v1156_v58  ;;  %v1160_v1 = vmax.f32 %v1078_v44, 0.0 }
 0x223   :  { %v1657_v56 = vpop.f32.mrb[21].mxu1  ;;  %v1312_v48 = vpop.permute.xlu1 %1311  ;;  %v1161_v30 = vmax.f32 %v1083_v13, 0.0  ;;  %v1425_v51 = vsel %vm1401_vm1, %v1381_v52, 0.0  ;;  %v1383_v3 = vmul.f32 %v2510_v34, %v1159_v45  ;;  %v1091_v36 = vadd.f32 %v1652_v59, %v2449_v15 }
 0x224   :  { %v1417_v2 = vsel %vm1401_vm1, %v1377_v63, 0.0  ;;  %v1378_v0 = vmul.f32 %v2485_v43, %v1154_v21  ;;  %v1658_v40 = vadd.f32 %v1657_v56, %v1656_v28  ;;  %v1659_v32 = vpop.f32.mrb[22].mxu1  ;;  %v1421_v43 = vsel %vm1401_vm1, %v1379_v38, 0.0 }
 0x225   :  { %v1418_v5 = vadd.f32 %v1417_v2, %v1416_v24  ;;  %v1660_v47 = vpop.f32.mrb[23].mxu1  ;;  %v1423_v53 = vsel %vm1401_vm1, %v1380_v14, 0.0  ;;  %v1427_v4 = vsel %vm1401_vm1, %v1382_v33, 0.0  ;;  %v1384_v12 = vmul.f32 %v2523_v29, %v1160_v1 }
 0x226   :  { %v1419_v61 = vsel %vm1401_vm1, %v1378_v0, 0.0  ;;  %v1661_v62 = vadd.f32 %v1660_v47, %v1659_v32  ;;  %v1317_v10 = vpop.permute.xlu0 %1316  ;;  %v1162_v37 = vmax.f32 %v1086_v26, 0.0  ;;  %v1094_v63 = vadd.f32 %v1655_v60, %v2451_v6 }
 0x227   :  { %v1420_v54 = vadd.f32 %v1419_v61, %v1418_v5  ;;  %v1322_v25 = vpop.permute.xlu1 %1321  ;;  %v1385_v28 = vmul.f32 %v2525_v35, %v1161_v30  ;;  %v1429_v34 = vsel %vm1401_vm1, %v1383_v3, 0.0  ;;  %v1163_v39 = vmax.f32 %v1091_v36, 0.0 }
 0x228   :  { %v1099_v15 = vadd.f32 %v1658_v40, %v2453_v11  ;;  %v1102_v56 = vadd.f32 %v1661_v62, %v2455_v17  ;;  %v1431_v2 = vsel %vm1401_vm1, %v1384_v12, 0.0  ;;  %v1386_v29 = vmul.f32 %v2538_v57, %v1162_v37 }
 0x229   :  { %v1422_v46 = vadd.f32 %v1421_v43, %v1420_v54  ;;  %v1164_v0 = vmax.f32 %v1094_v63, 0.0  ;;  %v1433_v60 = vsel %vm1401_vm1, %v1385_v28, 0.0  ;;  %v1387_v5 = vmul.f32 %v2541_v41, %v1163_v39 }
 0x22a   :  { %v1662_v27 = vpop.f32.mrb[24].mxu1  ;;  %v1327_v23 = vpop.permute.xlu0 %1326  ;;  %v1165_v47 = vmax.f32 %v1099_v15, 0.0  ;;  %v1166_v44 = vmax.f32 %v1102_v56, 0.0  ;;  %v1435_v62 = vsel %vm1401_vm1, %v1386_v29, 0.0 }
 0x22b   :  { %v1424_v31 = vadd.f32 %v1423_v53, %v1422_v46  ;;  %v1663_v55 = vpop.f32.mrb[25].mxu1  ;;  %v1332_v6 = vpop.permute.xlu1 %1331  ;;  %v1388_v57 = vmul.f32 %v1307_v49, %v1164_v0  ;;  %v1437_v45 = vsel %vm1401_vm1, %v1387_v5, 0.0 }
 0x22c   :  { %v1664_v24 = vadd.f32 %v1663_v55, %v1662_v27  ;;  %v1665_v22 = vpop.f32.mrb[26].mxu1  ;;  %v1389_v33 = vmul.f32 %v1312_v48, %v1165_v47  ;;  %v1390_v1 = vmul.f32 %v1317_v10, %v1166_v44 }
 0x22d   :  { %v1426_v9 = vadd.f32 %v1425_v51, %v1424_v31  ;;  %v1666_v58 = vpop.f32.mrb[27].mxu1  ;;  %v1439_v26 = vsel %vm1401_vm1, %v1388_v57, 0.0 }
 0x22e   :  { %v1667_v21 = vadd.f32 %v1666_v58, %v1665_v22  ;;  %v1107_v11 = vadd.f32 %v1664_v24, %v2457_v18  ;;  %v1337_v52 = vpop.permute.xlu0 %1336  ;;  %v1441_v55 = vsel %vm1401_vm1, %v1389_v33, 0.0 }
 0x22f   :  { %v1428_v38 = vadd.f32 %v1427_v4, %v1426_v9  ;;  %v1342_v18 = vpop.permute.xlu1 %1341 }
 0x230   :  { %v1110_v13 = vadd.f32 %v1667_v21, %v2459_v8  ;;  %v1167_v41 = vmax.f32 %v1107_v11, 0.0 }
 0x231   :  { %v1430_v59 = vadd.f32 %v1429_v34, %v1428_v38 }
 0x232   :  { %v1668_v32 = vpop.f32.mrb[28].mxu1  ;;  %v1168_v27 = vmax.f32 %v1110_v13, 0.0  ;;  %v1391_v51 = vmul.f32 %v1322_v25, %v1167_v41  ;;  %v812_v4 = vpop.permute.xlu0 %811 }
 0x233   :  { %v1432_v35 = vadd.f32 %v1431_v2, %v1430_v59  ;;  %v1669_v42 = vpop.f32.mrb[29].mxu1 }
 0x234   :  { %v1670_v40 = vadd.f32 %v1669_v42, %v1668_v32  ;;  %v1671_v14 = vpop.f32.mrb[30].mxu1  ;;  %v1392_v10 = vmul.f32 %v1327_v23, %v1168_v27  ;;  %v1445_v63 = vsel %vm1401_vm1, %v1391_v51, 0.0 }
 0x235   :  { %v1434_v17 = vadd.f32 %v1433_v60, %v1432_v35  ;;  %v1672_v61 = vpop.f32.mrb[31].mxu1 }
 0x236   :  { %v1673_v54 = vadd.f32 %v1672_v61, %v1671_v14  ;;  %v1115_v46 = vadd.f32 %v1670_v40, %v2461_v50  ;;  %v1443_v50 = vsel %vm1401_vm1, %v1390_v1, 0.0  ;;  %v1447_v34 = vsel %vm1401_vm1, %v1392_v10, 0.0  ;;  %v817_v2 = vpop.permute.xlu0 %816 }
 0x237   :  { %v1436_v43 = vadd.f32 %v1435_v62, %v1434_v17 }
 0x238   :  { %v1118_v30 = vadd.f32 %v1673_v54, %v2463_v16  ;;  %v1169_v3 = vmax.f32 %v1115_v46, 0.0  ;;  %v1347_v16 = vpop.permute.xlu1 %1346 }
 0x239   :  { %v1438_v53 = vadd.f32 %v1437_v45, %v1436_v43 }
 0x23a   :  { %v1674_v49 = vpop.f32.mrb[32].mxu1  ;;  %v1170_v9 = vmax.f32 %v1118_v30, 0.0  ;;  %v1393_v21 = vmul.f32 %v1332_v6, %v1169_v3  ;;  %v822_v61 = vpop.permute.xlu0 %821 }
 0x23b   :  { %v1440_v31 = vadd.f32 %v1439_v26, %v1438_v53  ;;  %v1675_v8 = vpop.f32.mrb[33].mxu1 }
 0x23c   :  { %v1676_v36 = vadd.f32 %v1675_v8, %v1674_v49  ;;  %v1677_v48 = vpop.f32.mrb[34].mxu1  ;;  %v1394_v39 = vmul.f32 %v1337_v52, %v1170_v9  ;;  %v1352_v60 = vpop.permute.xlu1 %1351 }
 0x23d   :  { %v1442_v24 = vadd.f32 %v1441_v55, %v1440_v31  ;;  %v1678_v22 = vpop.f32.mrb[35].mxu1 }
 0x23e   :  { %v1123_v58 = vadd.f32 %v1676_v36, %v2465_v7  ;;  %v1679_v12 = vadd.f32 %v1678_v22, %v1677_v48  ;;  %v1449_v7 = vsel %vm1401_vm1, %v1393_v21, 0.0  ;;  %v1451_v42 = vsel %vm1401_vm1, %v1394_v39, 0.0  ;;  %v1362_v8 = vpop.permute.xlu0 %1361 }
 0x23f   :  { %v1444_v37 = vadd.f32 %v1443_v50, %v1442_v24  ;;  %v1477_v22 = vlaneseq }
 0x240   :  { %v1171_v28 = vmax.f32 %v1123_v58, 0.0  ;;  %v1126_v25 = vadd.f32 %v1679_v12, %v2467_v19  ;;  %v1357_v43 = vpop.permute.xlu1 %1356 }
 0x241   :  { %v1446_v38 = vadd.f32 %v1445_v63, %v1444_v37  ;;  %v1478_v9 = vshrl.u32 %v1477_v22, 7 }
 0x242   :  { %v1172_v15 = vmax.f32 %v1126_v25, 0.0  ;;  %v1680_v59 = vpop.f32.mrb[36].mxu1  ;;  %v1395_v29 = vmul.f32 %v1342_v18, %v1171_v28  ;;  %v1475_v63 = vpop.permute.xlu0 %1474 }
 0x243   :  { %v1448_v56 = vadd.f32 %v1447_v34, %v1446_v38  ;;  %v1681_v23 = vpop.f32.mrb[37].mxu1 }
 0x244   :  { %v1682_v0 = vadd.f32 %v1681_v23, %v1680_v59  ;;  %v1683_v32 = vpop.f32.mrb[38].mxu1  ;;  %v1396_v19 = vmul.f32 %v1347_v16, %v1172_v15  ;;  %v1453_v40 = vsel %vm1401_vm1, %v1395_v29, 0.0  ;;  %v1367_v3 = vpop.permute.xlu1 %1366  ;;  %v1479_v16 = vsub.s32 0, %v1478_v9 }
 0x245   :  { %v1450_v35 = vadd.f32 %v1449_v7, %v1448_v56  ;;  %v1684_v6 = vpop.f32.mrb[39].mxu1 }
 0x246   :  { %v1131_v5 = vadd.f32 %v1682_v0, %v2469_v20  ;;  %v1685_v47 = vadd.f32 %v1684_v6, %v1683_v32  ;;  %v1455_v62 = vsel %vm1401_vm1, %v1396_v19, 0.0  ;;  %v1480_v28 = vrot.slane %v1475_v63, %v1479_v16 }
 0x247   :  { %v1452_v11 = vadd.f32 %v1451_v42, %v1450_v35 }
 0x248   :  { %v1173_v14 = vmax.f32 %v1131_v5, 0.0  ;;  %v1134_v17 = vadd.f32 %v1685_v47, %v812_v4 }
 0x249   :  { %v1454_v44 = vadd.f32 %v1453_v40, %v1452_v11 }
 0x24a   :  { %v1397_v57 = vmul.f32 %v1352_v60, %v1173_v14  ;;  %v1174_v13 = vmax.f32 %v1134_v17, 0.0  ;;  %v1686_v54 = vpop.f32.mrb[40].mxu1 }
 0x24b   :  { %v1456_v52 = vadd.f32 %v1455_v62, %v1454_v44  ;;  %v1687_v45 = vpop.f32.mrb[41].mxu1 }
 0x24c   :  { %v1457_v33 = vsel %vm1401_vm1, %v1397_v57, 0.0  ;;  %v1398_v41 = vmul.f32 %v1357_v43, %v1174_v13  ;;  %v1688_v20 = vadd.f32 %v1687_v45, %v1686_v54  ;;  %v1689_v46 = vpop.f32.mrb[42].mxu1 }
 0x24d   :  { %v1458_v18 = vadd.f32 %v1457_v33, %v1456_v52  ;;  %v1690_v53 = vpop.f32.mrb[43].mxu1 }
 0x24e   :  { %v1459_v1 = vsel %vm1401_vm1, %v1398_v41, 0.0  ;;  %v1139_v26 = vadd.f32 %v1688_v20, %v817_v2  ;;  %v1691_v27 = vadd.f32 %v1690_v53, %v1689_v46 }
 0x24f   :  { %v1460_v30 = vadd.f32 %v1459_v1, %v1458_v18 }
 0x250   :  { %v1175_v49 = vmax.f32 %v1139_v26, 0.0  ;;  %v1142_v31 = vadd.f32 %v1691_v27, %v822_v61 }
 0x252   :  { %v1399_v55 = vmul.f32 %v1362_v8, %v1175_v49  ;;  %v1176_v51 = vmax.f32 %v1142_v31, 0.0 }
 0x254   :  { %v1461_v36 = vsel %vm1401_vm1, %v1399_v55, 0.0  ;;  %v1400_v48 = vmul.f32 %v1367_v3, %v1176_v51 }
 0x255   :  { %v1462_v24 = vadd.f32 %v1461_v36, %v1460_v30 }
 0x256   :  { %v1463_v50 = vsel %vm1401_vm1, %v1400_v48, 0.0 }
 0x257   :  { %v1464_v4 = vadd.f32 %v1463_v50, %v1462_v24 }
 0x259   :  { %v1465_v10 = vrot.slane %v1464_v4, 4 }
 0x25b   :  { %v1466_v58 = vadd.f32 %v1465_v10, %v1464_v4 }
 0x25d   :  { %v1467_v12 = vrot.slane %v1466_v58, 2 }
 0x25f   :  { %v1468_v37 = vadd.f32 %v1467_v12, %v1466_v58 }
 0x261   :  { %v1469_v21 = vrot.slane %v1468_v37, 1 }
 0x263   :  { %v1470_v25 = vadd.f32 %v1469_v21, %v1468_v37 }
 0x265   :  { %v1481_v38 = vadd.f32 %v1480_v28, %v1470_v25 }
 0x267   :  { %1483 = vst.msk [vmem:[#allocation3] sm:$0x1] %vm1482_vm2, %v1481_v38 }
 0x268   :  { %1822 = shalt.err (!%p1819_p4)
}
 0x269   :  { %s1823_s26 = scalar_lea.hbm %s2618_s7, 16 }
 0x26a   :  { %p1824_p5 = scmp.ne.s32.totalorder %s2618_s7, %s1823_s26  ;;  %p1827_p6 = scmp.lt.u32.totalorder %s1823_s26, %s2618_s7 }
 0x26c   :  { %p1829_p7 = pnand %p1827_p6, %p1824_p5 }
 0x26e   :  { %1832 = shalt.err (!%p1829_p7)
}
 0x26f   :  { %1493 = dma.vmem_to_hbm [thread:$0]  %s1491_s21, 16, %s2618_s7, [#allocation4]  }
 0x270   :  { %1833 = dma.done.wait [#allocation4], 16  }
 0x271   :  { %1834 = vsyncadd [#allocation4], 4294967280 }
 0x272   :  { %1497 = vsyncpa [#allocation4], 1 }

</bundles_post_ra>
